<compile_context>
chip_gen: v7x
topology: tpu7x:2x2x1
jax: 0.10.0
libtpu: 0.0.40
codegen_flags: <defaults>
</compile_context>

<pallas_src>
import jax
import jax.numpy as jnp
import numpy as np
from jax import lax
from jax.experimental import pallas as pl
from jax.experimental.pallas import tpu as pltpu


def _round_up(x, m):
    return (x + m - 1) // m * m


# --------------------------- host-side constant preparation ---------------------------

def _conv_w2d(w):
    """PyTorch Conv1d weight (C_out, C_in, K) -> (C_out, K*Cr) matrix whose columns
    match the in-kernel im2col row order (row = k*Cr + c, Cr = C_in rounded up to 8)."""
    c_out, c_in, k = w.shape
    cr = _round_up(c_in, 8)
    w2 = jnp.zeros((c_out, k, cr), jnp.float32)
    w2 = w2.at[:, :, :c_in].set(jnp.transpose(w.astype(jnp.float32), (0, 2, 1)))
    return w2.reshape(c_out, k * cr)


def _sel_mats(l_in, taps, pad_l, pad_r, stride):
    """Host-precomputed tap-selection matrices T (taps, l_in, l_out) with
    T[k, i, j] = 1 iff i == j*stride + k - pad_l, i.e.
        (x @ T[k])[c, j] = zero_padded(x)[c, j*stride + k].
    Zero padding and stride are thereby folded into a constant MXU operand."""
    l_out = (l_in + pad_l + pad_r - taps) // stride + 1
    ri = np.arange(l_in)[:, None]
    ci = np.arange(l_out)[None, :]
    mats = np.stack(
        [(ri == stride * ci + (k - pad_l)).astype(np.float32) for k in range(taps)],
        axis=0)
    return jnp.asarray(mats), l_out


# --------------------------- fused Pallas kernel ---------------------------

def _make_fused_kernel(meta, n_weights):
    f32 = jnp.float32

    def kernel(x_ref, *refs):
        w_refs = refs[:n_weights]
        out_ref = refs[n_weights]
        col_ref = refs[n_weights + 1]      # im2col VMEM scratch, reused by every conv/pool

        def gather(x, t_ref):
            """Fill col_ref so that col_ref[k*Cr + c, j] = zero_padded(x)[c, j*stride + k],
            using one tiny constant-operand MXU matmul per tap.  All scratch stores stay
            at sublane-aligned offsets (Cr = round_up(C, 8))."""
            c = x.shape[0]
            k_taps, _, l_out = t_ref.shape
            cr = _round_up(c, 8)
            if c != cr:
                # the channel-rounding rows would otherwise hold stale VMEM bits
                col_ref[:k_taps * cr, :l_out] = jnp.zeros((k_taps * cr, l_out), f32)
            for k in range(k_taps):
                col_ref[k * cr:k * cr + c, :l_out] = jnp.dot(
                    x, t_ref[k], preferred_element_type=f32)
            return cr, l_out

        def conv(x, t_ref, w_ref, bias_ref=None, relu=False):
            """Conv1d(bias=False) with zero padding + stride folded into the tap gather,
            plus optional folded-BN bias and ReLU epilogue; one MXU matmul with
            contraction depth K*Cr."""
            k_taps = t_ref.shape[0]
            cr, l_out = gather(x, t_ref)
            out = jnp.dot(w_ref[...], col_ref[:k_taps * cr, :l_out],
                          preferred_element_type=f32)
            if bias_ref is not None:
                out = out + bias_ref[...]
            if relu:
                out = jnp.maximum(out, 0.0)
            return out

        def maxpool(y, t_ref):
            """ConstantPad1d(value=0) -> MaxPool1d(ds, stride=ds); the zero padding
            participates in the max, matching the PyTorch module."""
            c = y.shape[0]
            k_taps = t_ref.shape[0]
            cr, l_out = gather(y, t_ref)
            m = col_ref[0:c, :l_out]
            for k in range(1, k_taps):
                m = jnp.maximum(m, col_ref[k * cr:k * cr + c, :l_out])
            return m

        x = x_ref[0].astype(f32)                          # (C_in, L)

        wi = 0
        # Conv_Resnet.forward applies only self.first[0] (the conv, no BN/ReLU here).
        t_first, w_first = w_refs[wi], w_refs[wi + 1]
        wi += 2
        X = conv(x, t_first, w_first)
        Y = X

        for bm in meta["blocks"]:
            # skip path: pad(0) -> MaxPool1d(ds, ds) -> optional 1x1 conv
            if bm["ds"] > 1:
                s = maxpool(Y, w_refs[wi])
                wi += 1
            else:
                s = Y
            if bm["has_skip"]:
                s = jnp.dot(w_refs[wi][...], s, preferred_element_type=f32)
                wi += 1

            # main path: pad -> conv(k,1) [inference BN folded into W + bias, ReLU
            #            epilogue] -> pad -> conv(k, stride=ds)
            t_a, w_a, b_a = w_refs[wi:wi + 3]
            wi += 3
            Xa = conv(X, t_a, w_a, bias_ref=b_a, relu=True)
            # TODO(synk): nn.Dropout is identity in eval mode; training-mode dropout
            # is not implemented.
            t_b, w_b = w_refs[wi:wi + 2]
            wi += 2
            Xb = conv(Xa, t_b, w_b)

            # pre-activation merge: Y = skip + conv path ; X = ReLU(BN(Y))
            sc_m, sh_m = w_refs[wi:wi + 2]
            wi += 2
            comb = s + Xb
            Y = comb
            X = jnp.maximum(comb * sc_m[...] + sh_m[...], 0.0)

        out_ref[0] = X.astype(out_ref.dtype)

    return kernel


# --------------------------- fused forward (single pallas_call) ---------------------------

def conv_resnet_forward(x, params, cfg):
    N, C_in, L = x.shape
    k0 = cfg["kernel_size"]
    p0 = (k0 - 1) // 2                       # get_needed_padding(L, L, 1, k0, 1)

    weights = []
    meta = {"blocks": []}
    max_rows, max_cols = 8, 8                # scratch sizing

    def add_gather(c_in_, l_in, taps, pad_l, pad_r, stride):
        nonlocal max_rows, max_cols
        t, l_out = _sel_mats(l_in, taps, pad_l, pad_r, stride)
        weights.append(t)
        max_rows = max(max_rows, taps * _round_up(c_in_, 8))
        max_cols = max(max_cols, l_out)
        return l_out

    # first conv (symmetric padding p0, as in nn.Conv1d(padding=p0))
    cur_L = add_gather(C_in, L, k0, p0, p0, 1)
    weights.append(_conv_w2d(params["w_first"]))
    cur_C = params["w_first"].shape[0]

    for bp in params["blocks"]:
        ds, K = bp["ds"], bp["k"]
        c_in_blk = bp["w_a"].shape[1]
        c_out_blk = bp["w_a"].shape[0]
        has_skip = bp["w_skip"] is not None

        pad_l = (K - 1) // 2
        pad_r = (K - 1) - pad_l

        # skip path: pad(0) -> MaxPool1d(ds, ds) -> optional 1x1 conv
        if ds > 1:
            pool_l = (ds - 1) // 2
            add_gather(c_in_blk, cur_L, ds, pool_l, (ds - 1) - pool_l, ds)
        if has_skip:
            weights.append(bp["w_skip"][:, :, 0].astype(jnp.float32))

        # main path conv_a (stride 1, BN folded) and conv_b (stride ds)
        l_a = add_gather(c_in_blk, cur_L, K, pad_l, pad_r, 1)
        w_a_folded = bp["scale_a"][:, None, None] * bp["w_a"]
        weights.append(_conv_w2d(w_a_folded))
        weights.append(bp["shift_a"].reshape(c_out_blk, 1).astype(jnp.float32))

        l_b = add_gather(c_out_blk, l_a, K, pad_l, pad_r, ds)
        weights.append(_conv_w2d(bp["w_b"]))

        weights.append(bp["scale_m"].reshape(c_out_blk, 1).astype(jnp.float32))
        weights.append(bp["shift_m"].reshape(c_out_blk, 1).astype(jnp.float32))

        meta["blocks"].append({"ds": ds, "has_skip": has_skip})
        cur_L = l_b
        cur_C = c_out_blk

    n_w = len(weights)
    kernel = _make_fused_kernel(meta, n_w)

    in_specs = [pl.BlockSpec((1, C_in, L), lambda n: (n, 0, 0))]
    for w in weights:
        # constants: full-array blocks, same block every grid step (stay VMEM-resident)
        in_specs.append(pl.BlockSpec(tuple(w.shape), lambda n, nd=w.ndim: (0,) * nd))

    out = pl.pallas_call(
        kernel,
        out_shape=jax.ShapeDtypeStruct((N, cur_C, cur_L), jnp.float32),
        grid=(N,),
        in_specs=in_specs,
        out_specs=pl.BlockSpec((1, cur_C, cur_L), lambda n: (n, 0, 0)),
        scratch_shapes=[pltpu.VMEM((max_rows, max_cols), jnp.float32)],
        compiler_params=pltpu.CompilerParams(
            dimension_semantics=("parallel",),      # batch axis -> both TCs on megacore parts
            vmem_limit_bytes=32 * 1024 * 1024,      # explicit budget (fits v7x 64 MiB)
        ),
    )(x, *weights)

    return out.reshape(N, -1)


# --------------------------- pure-JAX reference ---------------------------

def ref_forward(x, params, cfg):
    def conv(x, w, stride, pad):
        xp = jnp.pad(x, ((0, 0), (0, 0), pad))
        return lax.conv_general_dilated(
            xp, w, (stride,), "VALID", dimension_numbers=("NCH", "OIH", "NCH"))

    def maxpool(x, d, pad):
        xp = jnp.pad(x, ((0, 0), (0, 0), pad))
        return lax.reduce_window(xp, -jnp.inf, lax.max,
                                 (1, 1, d), (1, 1, d), "VALID")

    k0 = cfg["kernel_size"]
    p0 = (k0 - 1) // 2
    X = conv(x, params["w_first"], 1, (p0, p0))
    Y = X
    for bp in params["blocks"]:
        ds, k = bp["ds"], bp["k"]
        left = (ds - 1) // 2
        s = maxpool(Y, ds, (left, (ds - 1) - left))
        if bp["w_skip"] is not None:
            s = conv(s, bp["w_skip"], 1, (0, 0))
        pad_l = (k - 1) // 2
        pad_r = (k - 1) - pad_l
        Xa = conv(X, bp["w_a"], 1, (pad_l, pad_r))
        Xa = jnp.maximum(Xa * bp["scale_a"][None, :, None] + bp["shift_a"][None, :, None], 0.0)
        Xb = conv(Xa, bp["w_b"], ds, (pad_l, pad_r))
        comb = s + Xb
        X = jnp.maximum(comb * bp["scale_m"][None, :, None] + bp["shift_m"][None, :, None], 0.0)
        Y = comb
    return X.reshape(X.shape[0], -1)


# --------------------------- parameter init ---------------------------

def init_params(key, cfg, seq_length):
    keys = jax.random.split(key, 128)
    it = iter(keys)

    def w(shape, scale=0.1):
        return scale * jax.random.normal(next(it), shape, jnp.float32)

    def bn(c):
        eps = 1e-5
        gamma = 1.0 + 0.1 * jax.random.normal(next(it), (c,), jnp.float32)
        beta = 0.1 * jax.random.normal(next(it), (c,), jnp.float32)
        mean = 0.1 * jax.random.normal(next(it), (c,), jnp.float32)
        var = 1.0 + 0.1 * jax.random.uniform(next(it), (c,), jnp.float32)
        scale = gamma / jnp.sqrt(var + eps)
        shift = beta - mean * scale
        return scale, shift

    params = {"w_first": w((cfg["num_kernels_first"], cfg["in_channels"], cfg["kernel_size"]))}
    blocks = []
    L = seq_length
    for ru in cfg["res_units"]:
        cin, cout, k = ru["in_channels"], ru["n_filters_out"], ru["kernel_size"]
        ds = L // ru["n_samples_out"]
        sa, ha = bn(cout)
        sm, hm = bn(cout)
        blocks.append(dict(
            ds=ds, k=k,
            w_skip=(w((cout, cin, 1)) if cin != cout else None),
            w_a=w((cout, cin, k)), scale_a=sa, shift_a=ha,
            w_b=w((cout, cout, k)), scale_m=sm, shift_m=hm,
        ))
        L = ru["n_samples_out"]
    params["blocks"] = blocks
    return params


# --------------------------- main ---------------------------

if __name__ == "__main__":
    config = dict(
        in_channels=4,
        num_kernels_first=8,
        kernel_size=5,
        res_units=[
            dict(in_channels=8,  n_samples_out=16, n_filters_out=16, kernel_size=5, dropout_rate=0.0),
            dict(in_channels=16, n_samples_out=8,  n_filters_out=32, kernel_size=5, dropout_rate=0.0),
        ],
    )
    seq_length = 32
    batch = 2

    key = jax.random.PRNGKey(0)
    kx, kp = jax.random.split(key)
    x = jax.random.normal(kx, (batch, config["in_channels"], seq_length), jnp.float32)
    params = init_params(kp, config, seq_length)

    out = conv_resnet_forward(x, params, config)
    out = jax.block_until_ready(out)

    ref = jax.block_until_ready(ref_forward(x, params, config))
    assert out.shape == (batch, 32 * 8), out.shape
    np.testing.assert_allclose(np.asarray(out), np.asarray(ref), rtol=1e-2, atol=1e-2)

    print("KERNEL_OK")
</pallas_src>

<mosaic_0001>
module attributes {stable_mosaic.version = 11 : i64} {
  func.func @kernel(%arg0: i32, %arg1: memref<1x4x32xf32, #tpu.memory_space<vmem>>, %arg2: memref<5x32x32xf32, #tpu.memory_space<vmem>>, %arg3: memref<8x40xf32, #tpu.memory_space<vmem>>, %arg4: memref<2x32x16xf32, #tpu.memory_space<vmem>>, %arg5: memref<16x8xf32, #tpu.memory_space<vmem>>, %arg6: memref<5x32x32xf32, #tpu.memory_space<vmem>>, %arg7: memref<16x40xf32, #tpu.memory_space<vmem>>, %arg8: memref<16x1xf32, #tpu.memory_space<vmem>>, %arg9: memref<5x32x16xf32, #tpu.memory_space<vmem>>, %arg10: memref<16x80xf32, #tpu.memory_space<vmem>>, %arg11: memref<16x1xf32, #tpu.memory_space<vmem>>, %arg12: memref<16x1xf32, #tpu.memory_space<vmem>>, %arg13: memref<2x16x8xf32, #tpu.memory_space<vmem>>, %arg14: memref<32x16xf32, #tpu.memory_space<vmem>>, %arg15: memref<5x16x16xf32, #tpu.memory_space<vmem>>, %arg16: memref<32x80xf32, #tpu.memory_space<vmem>>, %arg17: memref<32x1xf32, #tpu.memory_space<vmem>>, %arg18: memref<5x16x8xf32, #tpu.memory_space<vmem>>, %arg19: memref<32x160xf32, #tpu.memory_space<vmem>>, %arg20: memref<32x1xf32, #tpu.memory_space<vmem>>, %arg21: memref<32x1xf32, #tpu.memory_space<vmem>>, %arg22: memref<1x32x8xf32, #tpu.memory_space<vmem>>, %arg23: memref<160x32xf32, #tpu.memory_space<vmem>>) attributes {dimension_semantics = [#tpu.dimension_semantics<parallel>], iteration_bounds = array<i64: 2>, scalar_prefetch = 0 : i64, scratch_operands = 1 : i64, tpu.core_type = #tpu.core_type<tc>, window_params = [{transform_indices = @transform_0, window_bounds = array<i64: 1, 4, 32>}, {pipeline_mode = #tpu.pipeline_mode<synchronous>, transform_indices = @transform_1, window_bounds = array<i64: 5, 32, 32>}, {pipeline_mode = #tpu.pipeline_mode<synchronous>, transform_indices = @transform_2, window_bounds = array<i64: 8, 40>}, {pipeline_mode = #tpu.pipeline_mode<synchronous>, transform_indices = @transform_3, window_bounds = array<i64: 2, 32, 16>}, {pipeline_mode = #tpu.pipeline_mode<synchronous>, transform_indices = @transform_4, window_bounds = array<i64: 16, 8>}, {pipeline_mode = #tpu.pipeline_mode<synchronous>, transform_indices = @transform_5, window_bounds = array<i64: 5, 32, 32>}, {pipeline_mode = #tpu.pipeline_mode<synchronous>, transform_indices = @transform_6, window_bounds = array<i64: 16, 40>}, {pipeline_mode = #tpu.pipeline_mode<synchronous>, transform_indices = @transform_7, window_bounds = array<i64: 16, 1>}, {pipeline_mode = #tpu.pipeline_mode<synchronous>, transform_indices = @transform_8, window_bounds = array<i64: 5, 32, 16>}, {pipeline_mode = #tpu.pipeline_mode<synchronous>, transform_indices = @transform_9, window_bounds = array<i64: 16, 80>}, {pipeline_mode = #tpu.pipeline_mode<synchronous>, transform_indices = @transform_10, window_bounds = array<i64: 16, 1>}, {pipeline_mode = #tpu.pipeline_mode<synchronous>, transform_indices = @transform_11, window_bounds = array<i64: 16, 1>}, {pipeline_mode = #tpu.pipeline_mode<synchronous>, transform_indices = @transform_12, window_bounds = array<i64: 2, 16, 8>}, {pipeline_mode = #tpu.pipeline_mode<synchronous>, transform_indices = @transform_13, window_bounds = array<i64: 32, 16>}, {pipeline_mode = #tpu.pipeline_mode<synchronous>, transform_indices = @transform_14, window_bounds = array<i64: 5, 16, 16>}, {pipeline_mode = #tpu.pipeline_mode<synchronous>, transform_indices = @transform_15, window_bounds = array<i64: 32, 80>}, {pipeline_mode = #tpu.pipeline_mode<synchronous>, transform_indices = @transform_16, window_bounds = array<i64: 32, 1>}, {pipeline_mode = #tpu.pipeline_mode<synchronous>, transform_indices = @transform_17, window_bounds = array<i64: 5, 16, 8>}, {pipeline_mode = #tpu.pipeline_mode<synchronous>, transform_indices = @transform_18, window_bounds = array<i64: 32, 160>}, {pipeline_mode = #tpu.pipeline_mode<synchronous>, transform_indices = @transform_19, window_bounds = array<i64: 32, 1>}, {pipeline_mode = #tpu.pipeline_mode<synchronous>, transform_indices = @transform_20, window_bounds = array<i64: 32, 1>}, {transform_indices = @transform_21, window_bounds = array<i64: 1, 32, 8>}]} {
    %c0 = arith.constant 0 : index
    %c0_0 = arith.constant 0 : index
    %c0_1 = arith.constant 0 : index
    %0 = vector.load %arg1[%c0, %c0_0, %c0_1] : memref<1x4x32xf32, #tpu.memory_space<vmem>>, vector<1x4x32xf32>
    %1 = vector.shape_cast %0 : vector<1x4x32xf32> to vector<4x32xf32>
    %cst = arith.constant 0.000000e+00 : f32
    %2 = vector.broadcast %cst : f32 to vector<40x32xf32>
    %c0_2 = arith.constant 0 : index
    %c0_3 = arith.constant 0 : index
    %3 = vector.load %arg23[%c0_2, %c0_3] : memref<160x32xf32, #tpu.memory_space<vmem>>, vector<40x32xf32>
    tpu.vector_store %arg23[%c0_2, %c0_3], %2 {strides = array<i32>} : memref<160x32xf32, #tpu.memory_space<vmem>>, vector<40x32xf32>,
    %c0_4 = arith.constant 0 : index
    %c0_5 = arith.constant 0 : index
    %c0_6 = arith.constant 0 : index
    %4 = vector.load %arg2[%c0_4, %c0_5, %c0_6] : memref<5x32x32xf32, #tpu.memory_space<vmem>>, vector<1x32x32xf32>
    %5 = vector.shape_cast %4 : vector<1x32x32xf32> to vector<32x32xf32>
    %cst_7 = arith.constant dense<0.000000e+00> : vector<4x32xf32>
    %6 = tpu.matmul %1, %5, %cst_7 {dimension_numbers = #tpu.dot_dimension_numbers<[1], [0], [0], [1], [0, 0, 1, 1], [], []>} : vector<4x32xf32>, vector<32x32xf32>, vector<4x32xf32> -> vector<4x32xf32>
    %c0_8 = arith.constant 0 : index
    %c0_9 = arith.constant 0 : index
    %7 = vector.load %arg23[%c0_8, %c0_9] : memref<160x32xf32, #tpu.memory_space<vmem>>, vector<4x32xf32>
    tpu.vector_store %arg23[%c0_8, %c0_9], %6 {strides = array<i32>} : memref<160x32xf32, #tpu.memory_space<vmem>>, vector<4x32xf32>,
    %c1 = arith.constant 1 : index
    %c0_10 = arith.constant 0 : index
    %c0_11 = arith.constant 0 : index
    %8 = vector.load %arg2[%c1, %c0_10, %c0_11] : memref<5x32x32xf32, #tpu.memory_space<vmem>>, vector<1x32x32xf32>
    %9 = vector.shape_cast %8 : vector<1x32x32xf32> to vector<32x32xf32>
    %cst_12 = arith.constant dense<0.000000e+00> : vector<4x32xf32>
    %10 = tpu.matmul %1, %9, %cst_12 {dimension_numbers = #tpu.dot_dimension_numbers<[1], [0], [0], [1], [0, 0, 1, 1], [], []>} : vector<4x32xf32>, vector<32x32xf32>, vector<4x32xf32> -> vector<4x32xf32>
    %c8 = arith.constant 8 : index
    %c0_13 = arith.constant 0 : index
    %11 = vector.load %arg23[%c8, %c0_13] : memref<160x32xf32, #tpu.memory_space<vmem>>, vector<4x32xf32>
    tpu.vector_store %arg23[%c8, %c0_13], %10 {strides = array<i32>} : memref<160x32xf32, #tpu.memory_space<vmem>>, vector<4x32xf32>,
    %c2 = arith.constant 2 : index
    %c0_14 = arith.constant 0 : index
    %c0_15 = arith.constant 0 : index
    %12 = vector.load %arg2[%c2, %c0_14, %c0_15] : memref<5x32x32xf32, #tpu.memory_space<vmem>>, vector<1x32x32xf32>
    %13 = vector.shape_cast %12 : vector<1x32x32xf32> to vector<32x32xf32>
    %cst_16 = arith.constant dense<0.000000e+00> : vector<4x32xf32>
    %14 = tpu.matmul %1, %13, %cst_16 {dimension_numbers = #tpu.dot_dimension_numbers<[1], [0], [0], [1], [0, 0, 1, 1], [], []>} : vector<4x32xf32>, vector<32x32xf32>, vector<4x32xf32> -> vector<4x32xf32>
    %c16 = arith.constant 16 : index
    %c0_17 = arith.constant 0 : index
    %15 = vector.load %arg23[%c16, %c0_17] : memref<160x32xf32, #tpu.memory_space<vmem>>, vector<4x32xf32>
    tpu.vector_store %arg23[%c16, %c0_17], %14 {strides = array<i32>} : memref<160x32xf32, #tpu.memory_space<vmem>>, vector<4x32xf32>,
    %c3 = arith.constant 3 : index
    %c0_18 = arith.constant 0 : index
    %c0_19 = arith.constant 0 : index
    %16 = vector.load %arg2[%c3, %c0_18, %c0_19] : memref<5x32x32xf32, #tpu.memory_space<vmem>>, vector<1x32x32xf32>
    %17 = vector.shape_cast %16 : vector<1x32x32xf32> to vector<32x32xf32>
    %cst_20 = arith.constant dense<0.000000e+00> : vector<4x32xf32>
    %18 = tpu.matmul %1, %17, %cst_20 {dimension_numbers = #tpu.dot_dimension_numbers<[1], [0], [0], [1], [0, 0, 1, 1], [], []>} : vector<4x32xf32>, vector<32x32xf32>, vector<4x32xf32> -> vector<4x32xf32>
    %c24 = arith.constant 24 : index
    %c0_21 = arith.constant 0 : index
    %19 = vector.load %arg23[%c24, %c0_21] : memref<160x32xf32, #tpu.memory_space<vmem>>, vector<4x32xf32>
    tpu.vector_store %arg23[%c24, %c0_21], %18 {strides = array<i32>} : memref<160x32xf32, #tpu.memory_space<vmem>>, vector<4x32xf32>,
    %c4 = arith.constant 4 : index
    %c0_22 = arith.constant 0 : index
    %c0_23 = arith.constant 0 : index
    %20 = vector.load %arg2[%c4, %c0_22, %c0_23] : memref<5x32x32xf32, #tpu.memory_space<vmem>>, vector<1x32x32xf32>
    %21 = vector.shape_cast %20 : vector<1x32x32xf32> to vector<32x32xf32>
    %cst_24 = arith.constant dense<0.000000e+00> : vector<4x32xf32>
    %22 = tpu.matmul %1, %21, %cst_24 {dimension_numbers = #tpu.dot_dimension_numbers<[1], [0], [0], [1], [0, 0, 1, 1], [], []>} : vector<4x32xf32>, vector<32x32xf32>, vector<4x32xf32> -> vector<4x32xf32>
    %c32 = arith.constant 32 : index
    %c0_25 = arith.constant 0 : index
    %23 = vector.load %arg23[%c32, %c0_25] : memref<160x32xf32, #tpu.memory_space<vmem>>, vector<4x32xf32>
    tpu.vector_store %arg23[%c32, %c0_25], %22 {strides = array<i32>} : memref<160x32xf32, #tpu.memory_space<vmem>>, vector<4x32xf32>,
    %c0_26 = arith.constant 0 : index
    %c0_27 = arith.constant 0 : index
    %24 = vector.load %arg3[%c0_26, %c0_27] : memref<8x40xf32, #tpu.memory_space<vmem>>, vector<8x40xf32>
    %c0_28 = arith.constant 0 : index
    %c0_29 = arith.constant 0 : index
    %25 = vector.load %arg23[%c0_28, %c0_29] : memref<160x32xf32, #tpu.memory_space<vmem>>, vector<40x32xf32>
    %cst_30 = arith.constant dense<0.000000e+00> : vector<8x32xf32>
    %26 = tpu.matmul %24, %25, %cst_30 {dimension_numbers = #tpu.dot_dimension_numbers<[1], [0], [0], [1], [0, 0, 1, 1], [], []>} : vector<8x40xf32>, vector<40x32xf32>, vector<8x32xf32> -> vector<8x32xf32>
    %c0_31 = arith.constant 0 : index
    %c0_32 = arith.constant 0 : index
    %c0_33 = arith.constant 0 : index
    %27 = vector.load %arg4[%c0_31, %c0_32, %c0_33] : memref<2x32x16xf32, #tpu.memory_space<vmem>>, vector<1x32x16xf32>
    %28 = vector.shape_cast %27 : vector<1x32x16xf32> to vector<32x16xf32>
    %cst_34 = arith.constant dense<0.000000e+00> : vector<8x16xf32>
    %29 = tpu.matmul %26, %28, %cst_34 {dimension_numbers = #tpu.dot_dimension_numbers<[1], [0], [0], [1], [0, 0, 1, 1], [], []>} : vector<8x32xf32>, vector<32x16xf32>, vector<8x16xf32> -> vector<8x16xf32>
    %c0_35 = arith.constant 0 : index
    %c0_36 = arith.constant 0 : index
    %30 = vector.load %arg23[%c0_35, %c0_36] : memref<160x32xf32, #tpu.memory_space<vmem>>, vector<8x16xf32>
    tpu.vector_store %arg23[%c0_35, %c0_36], %29 {strides = array<i32>} : memref<160x32xf32, #tpu.memory_space<vmem>>, vector<8x16xf32>,
    %c1_37 = arith.constant 1 : index
    %c0_38 = arith.constant 0 : index
    %c0_39 = arith.constant 0 : index
    %31 = vector.load %arg4[%c1_37, %c0_38, %c0_39] : memref<2x32x16xf32, #tpu.memory_space<vmem>>, vector<1x32x16xf32>
    %32 = vector.shape_cast %31 : vector<1x32x16xf32> to vector<32x16xf32>
    %cst_40 = arith.constant dense<0.000000e+00> : vector<8x16xf32>
    %33 = tpu.matmul %26, %32, %cst_40 {dimension_numbers = #tpu.dot_dimension_numbers<[1], [0], [0], [1], [0, 0, 1, 1], [], []>} : vector<8x32xf32>, vector<32x16xf32>, vector<8x16xf32> -> vector<8x16xf32>
    %c8_41 = arith.constant 8 : index
    %c0_42 = arith.constant 0 : index
    %34 = vector.load %arg23[%c8_41, %c0_42] : memref<160x32xf32, #tpu.memory_space<vmem>>, vector<8x16xf32>
    tpu.vector_store %arg23[%c8_41, %c0_42], %33 {strides = array<i32>} : memref<160x32xf32, #tpu.memory_space<vmem>>, vector<8x16xf32>,
    %c0_43 = arith.constant 0 : index
    %c0_44 = arith.constant 0 : index
    %35 = vector.load %arg23[%c0_43, %c0_44] : memref<160x32xf32, #tpu.memory_space<vmem>>, vector<8x16xf32>
    %c8_45 = arith.constant 8 : index
    %c0_46 = arith.constant 0 : index
    %36 = vector.load %arg23[%c8_45, %c0_46] : memref<160x32xf32, #tpu.memory_space<vmem>>, vector<8x16xf32>
    %37 = arith.maximumf %35, %36 : vector<8x16xf32>
    %c0_47 = arith.constant 0 : index
    %c0_48 = arith.constant 0 : index
    %38 = vector.load %arg5[%c0_47, %c0_48] : memref<16x8xf32, #tpu.memory_space<vmem>>, vector<16x8xf32>
    %cst_49 = arith.constant dense<0.000000e+00> : vector<16x16xf32>
    %39 = tpu.matmul %38, %37, %cst_49 {dimension_numbers = #tpu.dot_dimension_numbers<[1], [0], [0], [1], [0, 0, 1, 1], [], []>} : vector<16x8xf32>, vector<8x16xf32>, vector<16x16xf32> -> vector<16x16xf32>
    %c0_50 = arith.constant 0 : index
    %c0_51 = arith.constant 0 : index
    %c0_52 = arith.constant 0 : index
    %40 = vector.load %arg6[%c0_50, %c0_51, %c0_52] : memref<5x32x32xf32, #tpu.memory_space<vmem>>, vector<1x32x32xf32>
    %41 = vector.shape_cast %40 : vector<1x32x32xf32> to vector<32x32xf32>
    %cst_53 = arith.constant dense<0.000000e+00> : vector<8x32xf32>
    %42 = tpu.matmul %26, %41, %cst_53 {dimension_numbers = #tpu.dot_dimension_numbers<[1], [0], [0], [1], [0, 0, 1, 1], [], []>} : vector<8x32xf32>, vector<32x32xf32>, vector<8x32xf32> -> vector<8x32xf32>
    %c0_54 = arith.constant 0 : index
    %c0_55 = arith.constant 0 : index
    %43 = vector.load %arg23[%c0_54, %c0_55] : memref<160x32xf32, #tpu.memory_space<vmem>>, vector<8x32xf32>
    tpu.vector_store %arg23[%c0_54, %c0_55], %42 {strides = array<i32>} : memref<160x32xf32, #tpu.memory_space<vmem>>, vector<8x32xf32>,
    %c1_56 = arith.constant 1 : index
    %c0_57 = arith.constant 0 : index
    %c0_58 = arith.constant 0 : index
    %44 = vector.load %arg6[%c1_56, %c0_57, %c0_58] : memref<5x32x32xf32, #tpu.memory_space<vmem>>, vector<1x32x32xf32>
    %45 = vector.shape_cast %44 : vector<1x32x32xf32> to vector<32x32xf32>
    %cst_59 = arith.constant dense<0.000000e+00> : vector<8x32xf32>
    %46 = tpu.matmul %26, %45, %cst_59 {dimension_numbers = #tpu.dot_dimension_numbers<[1], [0], [0], [1], [0, 0, 1, 1], [], []>} : vector<8x32xf32>, vector<32x32xf32>, vector<8x32xf32> -> vector<8x32xf32>
    %c8_60 = arith.constant 8 : index
    %c0_61 = arith.constant 0 : index
    %47 = vector.load %arg23[%c8_60, %c0_61] : memref<160x32xf32, #tpu.memory_space<vmem>>, vector<8x32xf32>
    tpu.vector_store %arg23[%c8_60, %c0_61], %46 {strides = array<i32>} : memref<160x32xf32, #tpu.memory_space<vmem>>, vector<8x32xf32>,
    %c2_62 = arith.constant 2 : index
    %c0_63 = arith.constant 0 : index
    %c0_64 = arith.constant 0 : index
    %48 = vector.load %arg6[%c2_62, %c0_63, %c0_64] : memref<5x32x32xf32, #tpu.memory_space<vmem>>, vector<1x32x32xf32>
    %49 = vector.shape_cast %48 : vector<1x32x32xf32> to vector<32x32xf32>
    %cst_65 = arith.constant dense<0.000000e+00> : vector<8x32xf32>
    %50 = tpu.matmul %26, %49, %cst_65 {dimension_numbers = #tpu.dot_dimension_numbers<[1], [0], [0], [1], [0, 0, 1, 1], [], []>} : vector<8x32xf32>, vector<32x32xf32>, vector<8x32xf32> -> vector<8x32xf32>
    %c16_66 = arith.constant 16 : index
    %c0_67 = arith.constant 0 : index
    %51 = vector.load %arg23[%c16_66, %c0_67] : memref<160x32xf32, #tpu.memory_space<vmem>>, vector<8x32xf32>
    tpu.vector_store %arg23[%c16_66, %c0_67], %50 {strides = array<i32>} : memref<160x32xf32, #tpu.memory_space<vmem>>, vector<8x32xf32>,
    %c3_68 = arith.constant 3 : index
    %c0_69 = arith.constant 0 : index
    %c0_70 = arith.constant 0 : index
    %52 = vector.load %arg6[%c3_68, %c0_69, %c0_70] : memref<5x32x32xf32, #tpu.memory_space<vmem>>, vector<1x32x32xf32>
    %53 = vector.shape_cast %52 : vector<1x32x32xf32> to vector<32x32xf32>
    %cst_71 = arith.constant dense<0.000000e+00> : vector<8x32xf32>
    %54 = tpu.matmul %26, %53, %cst_71 {dimension_numbers = #tpu.dot_dimension_numbers<[1], [0], [0], [1], [0, 0, 1, 1], [], []>} : vector<8x32xf32>, vector<32x32xf32>, vector<8x32xf32> -> vector<8x32xf32>
    %c24_72 = arith.constant 24 : index
    %c0_73 = arith.constant 0 : index
    %55 = vector.load %arg23[%c24_72, %c0_73] : memref<160x32xf32, #tpu.memory_space<vmem>>, vector<8x32xf32>
    tpu.vector_store %arg23[%c24_72, %c0_73], %54 {strides = array<i32>} : memref<160x32xf32, #tpu.memory_space<vmem>>, vector<8x32xf32>,
    %c4_74 = arith.constant 4 : index
    %c0_75 = arith.constant 0 : index
    %c0_76 = arith.constant 0 : index
    %56 = vector.load %arg6[%c4_74, %c0_75, %c0_76] : memref<5x32x32xf32, #tpu.memory_space<vmem>>, vector<1x32x32xf32>
    %57 = vector.shape_cast %56 : vector<1x32x32xf32> to vector<32x32xf32>
    %cst_77 = arith.constant dense<0.000000e+00> : vector<8x32xf32>
    %58 = tpu.matmul %26, %57, %cst_77 {dimension_numbers = #tpu.dot_dimension_numbers<[1], [0], [0], [1], [0, 0, 1, 1], [], []>} : vector<8x32xf32>, vector<32x32xf32>, vector<8x32xf32> -> vector<8x32xf32>
    %c32_78 = arith.constant 32 : index
    %c0_79 = arith.constant 0 : index
    %59 = vector.load %arg23[%c32_78, %c0_79] : memref<160x32xf32, #tpu.memory_space<vmem>>, vector<8x32xf32>
    tpu.vector_store %arg23[%c32_78, %c0_79], %58 {strides = array<i32>} : memref<160x32xf32, #tpu.memory_space<vmem>>, vector<8x32xf32>,
    %c0_80 = arith.constant 0 : index
    %c0_81 = arith.constant 0 : index
    %60 = vector.load %arg7[%c0_80, %c0_81] : memref<16x40xf32, #tpu.memory_space<vmem>>, vector<16x40xf32>
    %c0_82 = arith.constant 0 : index
    %c0_83 = arith.constant 0 : index
    %61 = vector.load %arg23[%c0_82, %c0_83] : memref<160x32xf32, #tpu.memory_space<vmem>>, vector<40x32xf32>
    %cst_84 = arith.constant dense<0.000000e+00> : vector<16x32xf32>
    %62 = tpu.matmul %60, %61, %cst_84 {dimension_numbers = #tpu.dot_dimension_numbers<[1], [0], [0], [1], [0, 0, 1, 1], [], []>} : vector<16x40xf32>, vector<40x32xf32>, vector<16x32xf32> -> vector<16x32xf32>
    %c0_85 = arith.constant 0 : index
    %c0_86 = arith.constant 0 : index
    %63 = vector.load %arg8[%c0_85, %c0_86] : memref<16x1xf32, #tpu.memory_space<vmem>>, vector<16x1xf32>
    %64 = vector.broadcast %63 : vector<16x1xf32> to vector<16x32xf32>
    %65 = arith.addf %62, %64 : vector<16x32xf32>
    %cst_87 = arith.constant 0.000000e+00 : f32
    %66 = vector.broadcast %cst_87 : f32 to vector<16x32xf32>
    %67 = arith.maximumf %65, %66 : vector<16x32xf32>
    %c0_88 = arith.constant 0 : index
    %c0_89 = arith.constant 0 : index
    %c0_90 = arith.constant 0 : index
    %68 = vector.load %arg9[%c0_88, %c0_89, %c0_90] : memref<5x32x16xf32, #tpu.memory_space<vmem>>, vector<1x32x16xf32>
    %69 = vector.shape_cast %68 : vector<1x32x16xf32> to vector<32x16xf32>
    %cst_91 = arith.constant dense<0.000000e+00> : vector<16x16xf32>
    %70 = tpu.matmul %67, %69, %cst_91 {dimension_numbers = #tpu.dot_dimension_numbers<[1], [0], [0], [1], [0, 0, 1, 1], [], []>} : vector<16x32xf32>, vector<32x16xf32>, vector<16x16xf32> -> vector<16x16xf32>
    %c0_92 = arith.constant 0 : index
    %c0_93 = arith.constant 0 : index
    %71 = vector.load %arg23[%c0_92, %c0_93] : memref<160x32xf32, #tpu.memory_space<vmem>>, vector<16x16xf32>
    tpu.vector_store %arg23[%c0_92, %c0_93], %70 {strides = array<i32>} : memref<160x32xf32, #tpu.memory_space<vmem>>, vector<16x16xf32>,
    %c1_94 = arith.constant 1 : index
    %c0_95 = arith.constant 0 : index
    %c0_96 = arith.constant 0 : index
    %72 = vector.load %arg9[%c1_94, %c0_95, %c0_96] : memref<5x32x16xf32, #tpu.memory_space<vmem>>, vector<1x32x16xf32>
    %73 = vector.shape_cast %72 : vector<1x32x16xf32> to vector<32x16xf32>
    %cst_97 = arith.constant dense<0.000000e+00> : vector<16x16xf32>
    %74 = tpu.matmul %67, %73, %cst_97 {dimension_numbers = #tpu.dot_dimension_numbers<[1], [0], [0], [1], [0, 0, 1, 1], [], []>} : vector<16x32xf32>, vector<32x16xf32>, vector<16x16xf32> -> vector<16x16xf32>
    %c16_98 = arith.constant 16 : index
    %c0_99 = arith.constant 0 : index
    %75 = vector.load %arg23[%c16_98, %c0_99] : memref<160x32xf32, #tpu.memory_space<vmem>>, vector<16x16xf32>
    tpu.vector_store %arg23[%c16_98, %c0_99], %74 {strides = array<i32>} : memref<160x32xf32, #tpu.memory_space<vmem>>, vector<16x16xf32>,
    %c2_100 = arith.constant 2 : index
    %c0_101 = arith.constant 0 : index
    %c0_102 = arith.constant 0 : index
    %76 = vector.load %arg9[%c2_100, %c0_101, %c0_102] : memref<5x32x16xf32, #tpu.memory_space<vmem>>, vector<1x32x16xf32>
    %77 = vector.shape_cast %76 : vector<1x32x16xf32> to vector<32x16xf32>
    %cst_103 = arith.constant dense<0.000000e+00> : vector<16x16xf32>
    %78 = tpu.matmul %67, %77, %cst_103 {dimension_numbers = #tpu.dot_dimension_numbers<[1], [0], [0], [1], [0, 0, 1, 1], [], []>} : vector<16x32xf32>, vector<32x16xf32>, vector<16x16xf32> -> vector<16x16xf32>
    %c32_104 = arith.constant 32 : index
    %c0_105 = arith.constant 0 : index
    %79 = vector.load %arg23[%c32_104, %c0_105] : memref<160x32xf32, #tpu.memory_space<vmem>>, vector<16x16xf32>
    tpu.vector_store %arg23[%c32_104, %c0_105], %78 {strides = array<i32>} : memref<160x32xf32, #tpu.memory_space<vmem>>, vector<16x16xf32>,
    %c3_106 = arith.constant 3 : index
    %c0_107 = arith.constant 0 : index
    %c0_108 = arith.constant 0 : index
    %80 = vector.load %arg9[%c3_106, %c0_107, %c0_108] : memref<5x32x16xf32, #tpu.memory_space<vmem>>, vector<1x32x16xf32>
    %81 = vector.shape_cast %80 : vector<1x32x16xf32> to vector<32x16xf32>
    %cst_109 = arith.constant dense<0.000000e+00> : vector<16x16xf32>
    %82 = tpu.matmul %67, %81, %cst_109 {dimension_numbers = #tpu.dot_dimension_numbers<[1], [0], [0], [1], [0, 0, 1, 1], [], []>} : vector<16x32xf32>, vector<32x16xf32>, vector<16x16xf32> -> vector<16x16xf32>
    %c48 = arith.constant 48 : index
    %c0_110 = arith.constant 0 : index
    %83 = vector.load %arg23[%c48, %c0_110] : memref<160x32xf32, #tpu.memory_space<vmem>>, vector<16x16xf32>
    tpu.vector_store %arg23[%c48, %c0_110], %82 {strides = array<i32>} : memref<160x32xf32, #tpu.memory_space<vmem>>, vector<16x16xf32>,
    %c4_111 = arith.constant 4 : index
    %c0_112 = arith.constant 0 : index
    %c0_113 = arith.constant 0 : index
    %84 = vector.load %arg9[%c4_111, %c0_112, %c0_113] : memref<5x32x16xf32, #tpu.memory_space<vmem>>, vector<1x32x16xf32>
    %85 = vector.shape_cast %84 : vector<1x32x16xf32> to vector<32x16xf32>
    %cst_114 = arith.constant dense<0.000000e+00> : vector<16x16xf32>
    %86 = tpu.matmul %67, %85, %cst_114 {dimension_numbers = #tpu.dot_dimension_numbers<[1], [0], [0], [1], [0, 0, 1, 1], [], []>} : vector<16x32xf32>, vector<32x16xf32>, vector<16x16xf32> -> vector<16x16xf32>
    %c64 = arith.constant 64 : index
    %c0_115 = arith.constant 0 : index
    %87 = vector.load %arg23[%c64, %c0_115] : memref<160x32xf32, #tpu.memory_space<vmem>>, vector<16x16xf32>
    tpu.vector_store %arg23[%c64, %c0_115], %86 {strides = array<i32>} : memref<160x32xf32, #tpu.memory_space<vmem>>, vector<16x16xf32>,
    %c0_116 = arith.constant 0 : index
    %c0_117 = arith.constant 0 : index
    %88 = vector.load %arg10[%c0_116, %c0_117] : memref<16x80xf32, #tpu.memory_space<vmem>>, vector<16x80xf32>
    %c0_118 = arith.constant 0 : index
    %c0_119 = arith.constant 0 : index
    %89 = vector.load %arg23[%c0_118, %c0_119] : memref<160x32xf32, #tpu.memory_space<vmem>>, vector<80x16xf32>
    %cst_120 = arith.constant dense<0.000000e+00> : vector<16x16xf32>
    %90 = tpu.matmul %88, %89, %cst_120 {dimension_numbers = #tpu.dot_dimension_numbers<[1], [0], [0], [1], [0, 0, 1, 1], [], []>} : vector<16x80xf32>, vector<80x16xf32>, vector<16x16xf32> -> vector<16x16xf32>
    %91 = arith.addf %39, %90 : vector<16x16xf32>
    %c0_121 = arith.constant 0 : index
    %c0_122 = arith.constant 0 : index
    %92 = vector.load %arg11[%c0_121, %c0_122] : memref<16x1xf32, #tpu.memory_space<vmem>>, vector<16x1xf32>
    %93 = vector.broadcast %92 : vector<16x1xf32> to vector<16x16xf32>
    %94 = arith.mulf %91, %93 : vector<16x16xf32>
    %c0_123 = arith.constant 0 : index
    %c0_124 = arith.constant 0 : index
    %95 = vector.load %arg12[%c0_123, %c0_124] : memref<16x1xf32, #tpu.memory_space<vmem>>, vector<16x1xf32>
    %96 = vector.broadcast %95 : vector<16x1xf32> to vector<16x16xf32>
    %97 = arith.addf %94, %96 : vector<16x16xf32>
    %cst_125 = arith.constant 0.000000e+00 : f32
    %98 = vector.broadcast %cst_125 : f32 to vector<16x16xf32>
    %99 = arith.maximumf %97, %98 : vector<16x16xf32>
    %c0_126 = arith.constant 0 : index
    %c0_127 = arith.constant 0 : index
    %c0_128 = arith.constant 0 : index
    %100 = vector.load %arg13[%c0_126, %c0_127, %c0_128] : memref<2x16x8xf32, #tpu.memory_space<vmem>>, vector<1x16x8xf32>
    %101 = vector.shape_cast %100 : vector<1x16x8xf32> to vector<16x8xf32>
    %cst_129 = arith.constant dense<0.000000e+00> : vector<16x8xf32>
    %102 = tpu.matmul %91, %101, %cst_129 {dimension_numbers = #tpu.dot_dimension_numbers<[1], [0], [0], [1], [0, 0, 1, 1], [], []>} : vector<16x16xf32>, vector<16x8xf32>, vector<16x8xf32> -> vector<16x8xf32>
    %c0_130 = arith.constant 0 : index
    %c0_131 = arith.constant 0 : index
    %103 = vector.load %arg23[%c0_130, %c0_131] : memref<160x32xf32, #tpu.memory_space<vmem>>, vector<16x8xf32>
    tpu.vector_store %arg23[%c0_130, %c0_131], %102 {strides = array<i32>} : memref<160x32xf32, #tpu.memory_space<vmem>>, vector<16x8xf32>,
    %c1_132 = arith.constant 1 : index
    %c0_133 = arith.constant 0 : index
    %c0_134 = arith.constant 0 : index
    %104 = vector.load %arg13[%c1_132, %c0_133, %c0_134] : memref<2x16x8xf32, #tpu.memory_space<vmem>>, vector<1x16x8xf32>
    %105 = vector.shape_cast %104 : vector<1x16x8xf32> to vector<16x8xf32>
    %cst_135 = arith.constant dense<0.000000e+00> : vector<16x8xf32>
    %106 = tpu.matmul %91, %105, %cst_135 {dimension_numbers = #tpu.dot_dimension_numbers<[1], [0], [0], [1], [0, 0, 1, 1], [], []>} : vector<16x16xf32>, vector<16x8xf32>, vector<16x8xf32> -> vector<16x8xf32>
    %c16_136 = arith.constant 16 : index
    %c0_137 = arith.constant 0 : index
    %107 = vector.load %arg23[%c16_136, %c0_137] : memref<160x32xf32, #tpu.memory_space<vmem>>, vector<16x8xf32>
    tpu.vector_store %arg23[%c16_136, %c0_137], %106 {strides = array<i32>} : memref<160x32xf32, #tpu.memory_space<vmem>>, vector<16x8xf32>,
    %c0_138 = arith.constant 0 : index
    %c0_139 = arith.constant 0 : index
    %108 = vector.load %arg23[%c0_138, %c0_139] : memref<160x32xf32, #tpu.memory_space<vmem>>, vector<16x8xf32>
    %c16_140 = arith.constant 16 : index
    %c0_141 = arith.constant 0 : index
    %109 = vector.load %arg23[%c16_140, %c0_141] : memref<160x32xf32, #tpu.memory_space<vmem>>, vector<16x8xf32>
    %110 = arith.maximumf %108, %109 : vector<16x8xf32>
    %c0_142 = arith.constant 0 : index
    %c0_143 = arith.constant 0 : index
    %111 = vector.load %arg14[%c0_142, %c0_143] : memref<32x16xf32, #tpu.memory_space<vmem>>, vector<32x16xf32>
    %cst_144 = arith.constant dense<0.000000e+00> : vector<32x8xf32>
    %112 = tpu.matmul %111, %110, %cst_144 {dimension_numbers = #tpu.dot_dimension_numbers<[1], [0], [0], [1], [0, 0, 1, 1], [], []>} : vector<32x16xf32>, vector<16x8xf32>, vector<32x8xf32> -> vector<32x8xf32>
    %c0_145 = arith.constant 0 : index
    %c0_146 = arith.constant 0 : index
    %c0_147 = arith.constant 0 : index
    %113 = vector.load %arg15[%c0_145, %c0_146, %c0_147] : memref<5x16x16xf32, #tpu.memory_space<vmem>>, vector<1x16x16xf32>
    %114 = vector.shape_cast %113 : vector<1x16x16xf32> to vector<16x16xf32>
    %cst_148 = arith.constant dense<0.000000e+00> : vector<16x16xf32>
    %115 = tpu.matmul %99, %114, %cst_148 {dimension_numbers = #tpu.dot_dimension_numbers<[1], [0], [0], [1], [0, 0, 1, 1], [], []>} : vector<16x16xf32>, vector<16x16xf32>, vector<16x16xf32> -> vector<16x16xf32>
    %c0_149 = arith.constant 0 : index
    %c0_150 = arith.constant 0 : index
    %116 = vector.load %arg23[%c0_149, %c0_150] : memref<160x32xf32, #tpu.memory_space<vmem>>, vector<16x16xf32>
    tpu.vector_store %arg23[%c0_149, %c0_150], %115 {strides = array<i32>} : memref<160x32xf32, #tpu.memory_space<vmem>>, vector<16x16xf32>,
    %c1_151 = arith.constant 1 : index
    %c0_152 = arith.constant 0 : index
    %c0_153 = arith.constant 0 : index
    %117 = vector.load %arg15[%c1_151, %c0_152, %c0_153] : memref<5x16x16xf32, #tpu.memory_space<vmem>>, vector<1x16x16xf32>
    %118 = vector.shape_cast %117 : vector<1x16x16xf32> to vector<16x16xf32>
    %cst_154 = arith.constant dense<0.000000e+00> : vector<16x16xf32>
    %119 = tpu.matmul %99, %118, %cst_154 {dimension_numbers = #tpu.dot_dimension_numbers<[1], [0], [0], [1], [0, 0, 1, 1], [], []>} : vector<16x16xf32>, vector<16x16xf32>, vector<16x16xf32> -> vector<16x16xf32>
    %c16_155 = arith.constant 16 : index
    %c0_156 = arith.constant 0 : index
    %120 = vector.load %arg23[%c16_155, %c0_156] : memref<160x32xf32, #tpu.memory_space<vmem>>, vector<16x16xf32>
    tpu.vector_store %arg23[%c16_155, %c0_156], %119 {strides = array<i32>} : memref<160x32xf32, #tpu.memory_space<vmem>>, vector<16x16xf32>,
    %c2_157 = arith.constant 2 : index
    %c0_158 = arith.constant 0 : index
    %c0_159 = arith.constant 0 : index
    %121 = vector.load %arg15[%c2_157, %c0_158, %c0_159] : memref<5x16x16xf32, #tpu.memory_space<vmem>>, vector<1x16x16xf32>
    %122 = vector.shape_cast %121 : vector<1x16x16xf32> to vector<16x16xf32>
    %cst_160 = arith.constant dense<0.000000e+00> : vector<16x16xf32>
    %123 = tpu.matmul %99, %122, %cst_160 {dimension_numbers = #tpu.dot_dimension_numbers<[1], [0], [0], [1], [0, 0, 1, 1], [], []>} : vector<16x16xf32>, vector<16x16xf32>, vector<16x16xf32> -> vector<16x16xf32>
    %c32_161 = arith.constant 32 : index
    %c0_162 = arith.constant 0 : index
    %124 = vector.load %arg23[%c32_161, %c0_162] : memref<160x32xf32, #tpu.memory_space<vmem>>, vector<16x16xf32>
    tpu.vector_store %arg23[%c32_161, %c0_162], %123 {strides = array<i32>} : memref<160x32xf32, #tpu.memory_space<vmem>>, vector<16x16xf32>,
    %c3_163 = arith.constant 3 : index
    %c0_164 = arith.constant 0 : index
    %c0_165 = arith.constant 0 : index
    %125 = vector.load %arg15[%c3_163, %c0_164, %c0_165] : memref<5x16x16xf32, #tpu.memory_space<vmem>>, vector<1x16x16xf32>
    %126 = vector.shape_cast %125 : vector<1x16x16xf32> to vector<16x16xf32>
    %cst_166 = arith.constant dense<0.000000e+00> : vector<16x16xf32>
    %127 = tpu.matmul %99, %126, %cst_166 {dimension_numbers = #tpu.dot_dimension_numbers<[1], [0], [0], [1], [0, 0, 1, 1], [], []>} : vector<16x16xf32>, vector<16x16xf32>, vector<16x16xf32> -> vector<16x16xf32>
    %c48_167 = arith.constant 48 : index
    %c0_168 = arith.constant 0 : index
    %128 = vector.load %arg23[%c48_167, %c0_168] : memref<160x32xf32, #tpu.memory_space<vmem>>, vector<16x16xf32>
    tpu.vector_store %arg23[%c48_167, %c0_168], %127 {strides = array<i32>} : memref<160x32xf32, #tpu.memory_space<vmem>>, vector<16x16xf32>,
    %c4_169 = arith.constant 4 : index
    %c0_170 = arith.constant 0 : index
    %c0_171 = arith.constant 0 : index
    %129 = vector.load %arg15[%c4_169, %c0_170, %c0_171] : memref<5x16x16xf32, #tpu.memory_space<vmem>>, vector<1x16x16xf32>
    %130 = vector.shape_cast %129 : vector<1x16x16xf32> to vector<16x16xf32>
    %cst_172 = arith.constant dense<0.000000e+00> : vector<16x16xf32>
    %131 = tpu.matmul %99, %130, %cst_172 {dimension_numbers = #tpu.dot_dimension_numbers<[1], [0], [0], [1], [0, 0, 1, 1], [], []>} : vector<16x16xf32>, vector<16x16xf32>, vector<16x16xf32> -> vector<16x16xf32>
    %c64_173 = arith.constant 64 : index
    %c0_174 = arith.constant 0 : index
    %132 = vector.load %arg23[%c64_173, %c0_174] : memref<160x32xf32, #tpu.memory_space<vmem>>, vector<16x16xf32>
    tpu.vector_store %arg23[%c64_173, %c0_174], %131 {strides = array<i32>} : memref<160x32xf32, #tpu.memory_space<vmem>>, vector<16x16xf32>,
    %c0_175 = arith.constant 0 : index
    %c0_176 = arith.constant 0 : index
    %133 = vector.load %arg16[%c0_175, %c0_176] : memref<32x80xf32, #tpu.memory_space<vmem>>, vector<32x80xf32>
    %c0_177 = arith.constant 0 : index
    %c0_178 = arith.constant 0 : index
    %134 = vector.load %arg23[%c0_177, %c0_178] : memref<160x32xf32, #tpu.memory_space<vmem>>, vector<80x16xf32>
    %cst_179 = arith.constant dense<0.000000e+00> : vector<32x16xf32>
    %135 = tpu.matmul %133, %134, %cst_179 {dimension_numbers = #tpu.dot_dimension_numbers<[1], [0], [0], [1], [0, 0, 1, 1], [], []>} : vector<32x80xf32>, vector<80x16xf32>, vector<32x16xf32> -> vector<32x16xf32>
    %c0_180 = arith.constant 0 : index
    %c0_181 = arith.constant 0 : index
    %136 = vector.load %arg17[%c0_180, %c0_181] : memref<32x1xf32, #tpu.memory_space<vmem>>, vector<32x1xf32>
    %137 = vector.broadcast %136 : vector<32x1xf32> to vector<32x16xf32>
    %138 = arith.addf %135, %137 : vector<32x16xf32>
    %cst_182 = arith.constant 0.000000e+00 : f32
    %139 = vector.broadcast %cst_182 : f32 to vector<32x16xf32>
    %140 = arith.maximumf %138, %139 : vector<32x16xf32>
    %c0_183 = arith.constant 0 : index
    %c0_184 = arith.constant 0 : index
    %c0_185 = arith.constant 0 : index
    %141 = vector.load %arg18[%c0_183, %c0_184, %c0_185] : memref<5x16x8xf32, #tpu.memory_space<vmem>>, vector<1x16x8xf32>
    %142 = vector.shape_cast %141 : vector<1x16x8xf32> to vector<16x8xf32>
    %cst_186 = arith.constant dense<0.000000e+00> : vector<32x8xf32>
    %143 = tpu.matmul %140, %142, %cst_186 {dimension_numbers = #tpu.dot_dimension_numbers<[1], [0], [0], [1], [0, 0, 1, 1], [], []>} : vector<32x16xf32>, vector<16x8xf32>, vector<32x8xf32> -> vector<32x8xf32>
    %c0_187 = arith.constant 0 : index
    %c0_188 = arith.constant 0 : index
    %144 = vector.load %arg23[%c0_187, %c0_188] : memref<160x32xf32, #tpu.memory_space<vmem>>, vector<32x8xf32>
    tpu.vector_store %arg23[%c0_187, %c0_188], %143 {strides = array<i32>} : memref<160x32xf32, #tpu.memory_space<vmem>>, vector<32x8xf32>,
    %c1_189 = arith.constant 1 : index
    %c0_190 = arith.constant 0 : index
    %c0_191 = arith.constant 0 : index
    %145 = vector.load %arg18[%c1_189, %c0_190, %c0_191] : memref<5x16x8xf32, #tpu.memory_space<vmem>>, vector<1x16x8xf32>
    %146 = vector.shape_cast %145 : vector<1x16x8xf32> to vector<16x8xf32>
    %cst_192 = arith.constant dense<0.000000e+00> : vector<32x8xf32>
    %147 = tpu.matmul %140, %146, %cst_192 {dimension_numbers = #tpu.dot_dimension_numbers<[1], [0], [0], [1], [0, 0, 1, 1], [], []>} : vector<32x16xf32>, vector<16x8xf32>, vector<32x8xf32> -> vector<32x8xf32>
    %c32_193 = arith.constant 32 : index
    %c0_194 = arith.constant 0 : index
    %148 = vector.load %arg23[%c32_193, %c0_194] : memref<160x32xf32, #tpu.memory_space<vmem>>, vector<32x8xf32>
    tpu.vector_store %arg23[%c32_193, %c0_194], %147 {strides = array<i32>} : memref<160x32xf32, #tpu.memory_space<vmem>>, vector<32x8xf32>,
    %c2_195 = arith.constant 2 : index
    %c0_196 = arith.constant 0 : index
    %c0_197 = arith.constant 0 : index
    %149 = vector.load %arg18[%c2_195, %c0_196, %c0_197] : memref<5x16x8xf32, #tpu.memory_space<vmem>>, vector<1x16x8xf32>
    %150 = vector.shape_cast %149 : vector<1x16x8xf32> to vector<16x8xf32>
    %cst_198 = arith.constant dense<0.000000e+00> : vector<32x8xf32>
    %151 = tpu.matmul %140, %150, %cst_198 {dimension_numbers = #tpu.dot_dimension_numbers<[1], [0], [0], [1], [0, 0, 1, 1], [], []>} : vector<32x16xf32>, vector<16x8xf32>, vector<32x8xf32> -> vector<32x8xf32>
    %c64_199 = arith.constant 64 : index
    %c0_200 = arith.constant 0 : index
    %152 = vector.load %arg23[%c64_199, %c0_200] : memref<160x32xf32, #tpu.memory_space<vmem>>, vector<32x8xf32>
    tpu.vector_store %arg23[%c64_199, %c0_200], %151 {strides = array<i32>} : memref<160x32xf32, #tpu.memory_space<vmem>>, vector<32x8xf32>,
    %c3_201 = arith.constant 3 : index
    %c0_202 = arith.constant 0 : index
    %c0_203 = arith.constant 0 : index
    %153 = vector.load %arg18[%c3_201, %c0_202, %c0_203] : memref<5x16x8xf32, #tpu.memory_space<vmem>>, vector<1x16x8xf32>
    %154 = vector.shape_cast %153 : vector<1x16x8xf32> to vector<16x8xf32>
    %cst_204 = arith.constant dense<0.000000e+00> : vector<32x8xf32>
    %155 = tpu.matmul %140, %154, %cst_204 {dimension_numbers = #tpu.dot_dimension_numbers<[1], [0], [0], [1], [0, 0, 1, 1], [], []>} : vector<32x16xf32>, vector<16x8xf32>, vector<32x8xf32> -> vector<32x8xf32>
    %c96 = arith.constant 96 : index
    %c0_205 = arith.constant 0 : index
    %156 = vector.load %arg23[%c96, %c0_205] : memref<160x32xf32, #tpu.memory_space<vmem>>, vector<32x8xf32>
    tpu.vector_store %arg23[%c96, %c0_205], %155 {strides = array<i32>} : memref<160x32xf32, #tpu.memory_space<vmem>>, vector<32x8xf32>,
    %c4_206 = arith.constant 4 : index
    %c0_207 = arith.constant 0 : index
    %c0_208 = arith.constant 0 : index
    %157 = vector.load %arg18[%c4_206, %c0_207, %c0_208] : memref<5x16x8xf32, #tpu.memory_space<vmem>>, vector<1x16x8xf32>
    %158 = vector.shape_cast %157 : vector<1x16x8xf32> to vector<16x8xf32>
    %cst_209 = arith.constant dense<0.000000e+00> : vector<32x8xf32>
    %159 = tpu.matmul %140, %158, %cst_209 {dimension_numbers = #tpu.dot_dimension_numbers<[1], [0], [0], [1], [0, 0, 1, 1], [], []>} : vector<32x16xf32>, vector<16x8xf32>, vector<32x8xf32> -> vector<32x8xf32>
    %c128 = arith.constant 128 : index
    %c0_210 = arith.constant 0 : index
    %160 = vector.load %arg23[%c128, %c0_210] : memref<160x32xf32, #tpu.memory_space<vmem>>, vector<32x8xf32>
    tpu.vector_store %arg23[%c128, %c0_210], %159 {strides = array<i32>} : memref<160x32xf32, #tpu.memory_space<vmem>>, vector<32x8xf32>,
    %c0_211 = arith.constant 0 : index
    %c0_212 = arith.constant 0 : index
    %161 = vector.load %arg19[%c0_211, %c0_212] : memref<32x160xf32, #tpu.memory_space<vmem>>, vector<32x160xf32>
    %c0_213 = arith.constant 0 : index
    %c0_214 = arith.constant 0 : index
    %162 = vector.load %arg23[%c0_213, %c0_214] : memref<160x32xf32, #tpu.memory_space<vmem>>, vector<160x8xf32>
    %cst_215 = arith.constant dense<0.000000e+00> : vector<32x8xf32>
    %163 = tpu.matmul %161, %162, %cst_215 {dimension_numbers = #tpu.dot_dimension_numbers<[1], [0], [0], [1], [0, 0, 1, 1], [], []>} : vector<32x160xf32>, vector<160x8xf32>, vector<32x8xf32> -> vector<32x8xf32>
    %164 = arith.addf %112, %163 : vector<32x8xf32>
    %c0_216 = arith.constant 0 : index
    %c0_217 = arith.constant 0 : index
    %165 = vector.load %arg20[%c0_216, %c0_217] : memref<32x1xf32, #tpu.memory_space<vmem>>, vector<32x1xf32>
    %166 = vector.broadcast %165 : vector<32x1xf32> to vector<32x8xf32>
    %167 = arith.mulf %164, %166 : vector<32x8xf32>
    %c0_218 = arith.constant 0 : index
    %c0_219 = arith.constant 0 : index
    %168 = vector.load %arg21[%c0_218, %c0_219] : memref<32x1xf32, #tpu.memory_space<vmem>>, vector<32x1xf32>
    %169 = vector.broadcast %168 : vector<32x1xf32> to vector<32x8xf32>
    %170 = arith.addf %167, %169 : vector<32x8xf32>
    %cst_220 = arith.constant 0.000000e+00 : f32
    %171 = vector.broadcast %cst_220 : f32 to vector<32x8xf32>
    %172 = arith.maximumf %170, %171 : vector<32x8xf32>
    %c0_221 = arith.constant 0 : index
    %c0_222 = arith.constant 0 : index
    %c0_223 = arith.constant 0 : index
    %173 = vector.load %arg22[%c0_221, %c0_222, %c0_223] : memref<1x32x8xf32, #tpu.memory_space<vmem>>, vector<1x32x8xf32>
    %174 = vector.shape_cast %173 : vector<1x32x8xf32> to vector<32x8xf32>
    %175 = vector.shape_cast %172 : vector<32x8xf32> to vector<1x32x8xf32>
    tpu.vector_store %arg22[%c0_221, %c0_222, %c0_223], %175 {strides = array<i32>} : memref<1x32x8xf32, #tpu.memory_space<vmem>>, vector<1x32x8xf32>,
    return
  }
  func.func @transform_0(%arg0: i32) -> (i32, i32, i32) {
    %c0_i32 = arith.constant 0 : i32
    %c0_i32_0 = arith.constant 0 : i32
    %c0_i32_1 = arith.constant 0 : i32
    return %arg0, %c0_i32, %c0_i32_0 : i32, i32, i32
  }
  func.func @transform_1(%arg0: i32) -> (i32, i32, i32) {
    %c0_i32 = arith.constant 0 : i32
    %c0_i32_0 = arith.constant 0 : i32
    %c0_i32_1 = arith.constant 0 : i32
    %c0_i32_2 = arith.constant 0 : i32
    return %c0_i32, %c0_i32_0, %c0_i32_1 : i32, i32, i32
  }
  func.func @transform_2(%arg0: i32) -> (i32, i32) {
    %c0_i32 = arith.constant 0 : i32
    %c0_i32_0 = arith.constant 0 : i32
    %c0_i32_1 = arith.constant 0 : i32
    return %c0_i32, %c0_i32_0 : i32, i32
  }
  func.func @transform_3(%arg0: i32) -> (i32, i32, i32) {
    %c0_i32 = arith.constant 0 : i32
    %c0_i32_0 = arith.constant 0 : i32
    %c0_i32_1 = arith.constant 0 : i32
    %c0_i32_2 = arith.constant 0 : i32
    return %c0_i32, %c0_i32_0, %c0_i32_1 : i32, i32, i32
  }
  func.func @transform_4(%arg0: i32) -> (i32, i32) {
    %c0_i32 = arith.constant 0 : i32
    %c0_i32_0 = arith.constant 0 : i32
    %c0_i32_1 = arith.constant 0 : i32
    return %c0_i32, %c0_i32_0 : i32, i32
  }
  func.func @transform_5(%arg0: i32) -> (i32, i32, i32) {
    %c0_i32 = arith.constant 0 : i32
    %c0_i32_0 = arith.constant 0 : i32
    %c0_i32_1 = arith.constant 0 : i32
    %c0_i32_2 = arith.constant 0 : i32
    return %c0_i32, %c0_i32_0, %c0_i32_1 : i32, i32, i32
  }
  func.func @transform_6(%arg0: i32) -> (i32, i32) {
    %c0_i32 = arith.constant 0 : i32
    %c0_i32_0 = arith.constant 0 : i32
    %c0_i32_1 = arith.constant 0 : i32
    return %c0_i32, %c0_i32_0 : i32, i32
  }
  func.func @transform_7(%arg0: i32) -> (i32, i32) {
    %c0_i32 = arith.constant 0 : i32
    %c0_i32_0 = arith.constant 0 : i32
    %c0_i32_1 = arith.constant 0 : i32
    return %c0_i32, %c0_i32_0 : i32, i32
  }
  func.func @transform_8(%arg0: i32) -> (i32, i32, i32) {
    %c0_i32 = arith.constant 0 : i32
    %c0_i32_0 = arith.constant 0 : i32
    %c0_i32_1 = arith.constant 0 : i32
    %c0_i32_2 = arith.constant 0 : i32
    return %c0_i32, %c0_i32_0, %c0_i32_1 : i32, i32, i32
  }
  func.func @transform_9(%arg0: i32) -> (i32, i32) {
    %c0_i32 = arith.constant 0 : i32
    %c0_i32_0 = arith.constant 0 : i32
    %c0_i32_1 = arith.constant 0 : i32
    return %c0_i32, %c0_i32_0 : i32, i32
  }
  func.func @transform_10(%arg0: i32) -> (i32, i32) {
    %c0_i32 = arith.constant 0 : i32
    %c0_i32_0 = arith.constant 0 : i32
    %c0_i32_1 = arith.constant 0 : i32
    return %c0_i32, %c0_i32_0 : i32, i32
  }
  func.func @transform_11(%arg0: i32) -> (i32, i32) {
    %c0_i32 = arith.constant 0 : i32
    %c0_i32_0 = arith.constant 0 : i32
    %c0_i32_1 = arith.constant 0 : i32
    return %c0_i32, %c0_i32_0 : i32, i32
  }
  func.func @transform_12(%arg0: i32) -> (i32, i32, i32) {
    %c0_i32 = arith.constant 0 : i32
    %c0_i32_0 = arith.constant 0 : i32
    %c0_i32_1 = arith.constant 0 : i32
    %c0_i32_2 = arith.constant 0 : i32
    return %c0_i32, %c0_i32_0, %c0_i32_1 : i32, i32, i32
  }
  func.func @transform_13(%arg0: i32) -> (i32, i32) {
    %c0_i32 = arith.constant 0 : i32
    %c0_i32_0 = arith.constant 0 : i32
    %c0_i32_1 = arith.constant 0 : i32
    return %c0_i32, %c0_i32_0 : i32, i32
  }
  func.func @transform_14(%arg0: i32) -> (i32, i32, i32) {
    %c0_i32 = arith.constant 0 : i32
    %c0_i32_0 = arith.constant 0 : i32
    %c0_i32_1 = arith.constant 0 : i32
    %c0_i32_2 = arith.constant 0 : i32
    return %c0_i32, %c0_i32_0, %c0_i32_1 : i32, i32, i32
  }
  func.func @transform_15(%arg0: i32) -> (i32, i32) {
    %c0_i32 = arith.constant 0 : i32
    %c0_i32_0 = arith.constant 0 : i32
    %c0_i32_1 = arith.constant 0 : i32
    return %c0_i32, %c0_i32_0 : i32, i32
  }
  func.func @transform_16(%arg0: i32) -> (i32, i32) {
    %c0_i32 = arith.constant 0 : i32
    %c0_i32_0 = arith.constant 0 : i32
    %c0_i32_1 = arith.constant 0 : i32
    return %c0_i32, %c0_i32_0 : i32, i32
  }
  func.func @transform_17(%arg0: i32) -> (i32, i32, i32) {
    %c0_i32 = arith.constant 0 : i32
    %c0_i32_0 = arith.constant 0 : i32
    %c0_i32_1 = arith.constant 0 : i32
    %c0_i32_2 = arith.constant 0 : i32
    return %c0_i32, %c0_i32_0, %c0_i32_1 : i32, i32, i32
  }
  func.func @transform_18(%arg0: i32) -> (i32, i32) {
    %c0_i32 = arith.constant 0 : i32
    %c0_i32_0 = arith.constant 0 : i32
    %c0_i32_1 = arith.constant 0 : i32
    return %c0_i32, %c0_i32_0 : i32, i32
  }
  func.func @transform_19(%arg0: i32) -> (i32, i32) {
    %c0_i32 = arith.constant 0 : i32
    %c0_i32_0 = arith.constant 0 : i32
    %c0_i32_1 = arith.constant 0 : i32
    return %c0_i32, %c0_i32_0 : i32, i32
  }
  func.func @transform_20(%arg0: i32) -> (i32, i32) {
    %c0_i32 = arith.constant 0 : i32
    %c0_i32_0 = arith.constant 0 : i32
    %c0_i32_1 = arith.constant 0 : i32
    return %c0_i32, %c0_i32_0 : i32, i32
  }
  func.func @transform_21(%arg0: i32) -> (i32, i32, i32) {
    %c0_i32 = arith.constant 0 : i32
    %c0_i32_0 = arith.constant 0 : i32
    %c0_i32_1 = arith.constant 0 : i32
    return %arg0, %c0_i32, %c0_i32_0 : i32, i32, i32
  }
}

</mosaic_0001>

<bundles_post_ra>
// kernel: tpu_custom_call.1
= control target key start
LH: loop header
LB: loop body
LE: loop exit
PB: predicated region body
PF: predicated region fallthrough
CT: control target
= control target key end

     0   :  { %s5677_s0 = inlined_call_operand.vmem [shape: f32[2,4,32], index: 0, kind: input, shape index: {}]   ;;  %s5678_s1 = inlined_call_operand.vmem [shape: f32[5,32,32], index: 1, kind: input, shape index: {}]   ;;  %s5679_s2 = inlined_call_operand.vmem [shape: f32[8,40], index: 2, kind: input, shape index: {}]   ;;  %s5680_s3 = inlined_call_operand.vmem [shape: f32[2,32,16], index: 3, kind: input, shape index: {}]   ;;  %s5681_s4 = inlined_call_operand.vmem [shape: f32[16,8], index: 4, kind: input, shape index: {}]   ;;  %s5682_s5 = inlined_call_operand.vmem [shape: f32[5,32,32], index: 5, kind: input, shape index: {}]   ;;  %s5683_s6 = inlined_call_operand.vmem [shape: f32[16,40], index: 6, kind: input, shape index: {}]   ;;  %s5684_s7 = inlined_call_operand.vmem [shape: f32[16,1], index: 7, kind: input, shape index: {}]   ;;  %s5685_s8 = inlined_call_operand.vmem [shape: f32[5,32,16], index: 8, kind: input, shape index: {}]   ;;  %s5686_s9 = inlined_call_operand.vmem [shape: f32[16,80], index: 9, kind: input, shape index: {}]   ;;  %s5687_s10 = inlined_call_operand.vmem [shape: f32[16,1], index: 10, kind: input, shape index: {}]   ;;  %s5688_s11 = inlined_call_operand.vmem [shape: f32[16,1], index: 11, kind: input, shape index: {}]   ;;  %s5689_s12 = inlined_call_operand.vmem [shape: f32[2,16,8], index: 12, kind: input, shape index: {}]   ;;  %s5690_s13 = inlined_call_operand.vmem [shape: f32[32,16], index: 13, kind: input, shape index: {}]   ;;  %s5691_s14 = inlined_call_operand.vmem [shape: f32[5,16,16], index: 14, kind: input, shape index: {}]   ;;  %s5692_s15 = inlined_call_operand.vmem [shape: f32[32,80], index: 15, kind: input, shape index: {}]   ;;  %s5693_s16 = inlined_call_operand.vmem [shape: f32[32,1], index: 16, kind: input, shape index: {}]   ;;  %s5694_s17 = inlined_call_operand.vmem [shape: f32[5,16,8], index: 17, kind: input, shape index: {}]   ;;  %s5695_s18 = inlined_call_operand.vmem [shape: f32[32,160], index: 18, kind: input, shape index: {}]   ;;  %s5696_s19 = inlined_call_operand.vmem [shape: f32[32,1], index: 19, kind: input, shape index: {}]   ;;  %s5697_s20 = inlined_call_operand.vmem [shape: f32[32,1], index: 20, kind: input, shape index: {}]   ;;  %s5698_s21 = inlined_call_operand.vmem [shape: f32[2,32,8], index: 21, kind: output, shape index: {}]  }
   0x1   :  { %5704 = sst [smem:[#allocation3_spill]] %s5677_s0 }
   0x2   :  { %5705 = sst [smem:[#allocation4_spill]] %s5678_s1 }
   0x3   :  { %5706 = sst [smem:[#allocation5_spill]] %s5679_s2  ;;  %s5031_s2 = smov 0  }
   0x4   :  { %5707 = sst [smem:[#allocation6_spill]] %s5680_s3 }
   0x5   :  { %5708 = sst [smem:[#allocation7_spill]] %s5681_s4 }
   0x6   :  { %5709 = sst [smem:[#allocation8_spill]] %s5682_s5 }
   0x7 LB: > { %s3917_s25 = sadd.s32 4294967295, %s4915_s2   ;;  %p3921_p0 = scmp.ge.s32.totalorder %s4915_s2, 1  ;;  %s4915_s2 = sphi %s5031_s2, %s31_s2  }
   0x8   : > { %p586_p1 = scmp.lt.s32.totalorder %s4915_s2, 3 }
   0xa   : > { %p587_p2 = pnand %p3921_p0, %p586_p1 }
   0xb   : > { %s5710_s3 = sld [smem:[#allocation4_spill]] (!%p587_p2)  ;;  %v4917_v3 = vmov (!%p587_p2), 0.0|0.0   ;;  %p5061_p3 = scmp.lt.s32.totalorder (!%p587_p2), %s3917_s25, 1  ;;  %vm655_vm0 = vcmask (!%p587_p2), 261120   ;;  %vm4918_vm1 = vmmov (!%p587_p2), 0   ;;  %v4919_v11 = vmov (!%p587_p2), 0.0  }
   0xc   : > { %590 = sbr.rel (%p587_p2) target bundleno = 2363 (0x93b), region = 104  ;;  %4645 = vmatprep.subr.bf16.mxu0 (!%p587_p2), %v4917_v3  ;;  %4651 = vmatprep.subr.bf16.mxu1 (!%p587_p2), %v4917_v3  ;;  %656 = vst.msk [vmem:[#allocation2] sm:$0xff] (!%p587_p2), %vm655_vm0, %v4919_v11  ;;  %657 = vst.msk [vmem:[#allocation2 + $0x8] sm:$0xff] (!%p587_p2), %vm655_vm0, %v4919_v11  ;;  %s5712_s0 = sld [smem:[#allocation3_spill]] (!%p587_p2)  ;;  %vm738_vm2 = vcmask (!%p587_p2), 257024   ;;  %vm1050_vm3 = vcmask (!%p587_p2), 326656  }
   0xd   : > { %4277 = vmatprep.mubr.msk.f32.mxu0 (!%p587_p2), %vm4918_vm1, %v4919_v11  ;;  %658 = vst.msk [vmem:[#allocation2 + $0x10] sm:$0xff] (!%p587_p2), %vm655_vm0, %v4919_v11  ;;  %659 = vst.msk [vmem:[#allocation2 + $0x18] sm:$0xff] (!%p587_p2), %vm655_vm0, %v4919_v11  ;;  %4288 = vmatprep.mubr.msk.f32.mxu1 (!%p587_p2), %vm4918_vm1, %v4919_v11  ;;  %s5714_s28 = sld [smem:[#allocation5_spill]] (!%p587_p2)  ;;  %s5715_s1 = sld [smem:[#allocation8_spill]] (!%p587_p2)  ;;  %vm1201_vm4 = vcmask (!%p587_p2), 130048   ;;  %vm2274_vm5 = vcmask (!%p587_p2), 64512  }
   0xe   : > { %660 = vst.msk [vmem:[#allocation2 + $0x20] sm:$0xff] (!%p587_p2), %vm655_vm0, %v4919_v11  ;;  %s5716_s27 = sld [smem:[#allocation7_spill]] (!%p587_p2)  ;;  %vm2192_vm6 = vcmask (!%p587_p2), 654336  }
  0x11   : > { %v661_v0 = vld [vmem:[%s5710_s3] sm:$0xff] (!%p587_p2)  ;;  %v662_v1 = vld [vmem:[%s5710_s3 + $0x8] sm:$0xff] (!%p587_p2)  ;;  %v663_v6 = vld [vmem:[%s5710_s3 + $0x10] sm:$0xff] (!%p587_p2) }
  0x12   : > { %v3926_v2 = vld [vmem:[%s5710_s3 + $0x20] sm:$0xff] (!%p587_p2)  ;;  %v4646_v4 = vpack.c.bf16 (!%p587_p2), %v662_v1, %v661_v0  ;;  %v3927_v5 = vld [vmem:[%s5710_s3 + $0x28] sm:$0xff] (!%p587_p2)  ;;  %v664_v7 = vld [vmem:[%s5710_s3 + $0x18] sm:$0xff] (!%p587_p2) }
  0x13   : > { %v4652_v8 = vpack.c.bf16 %v3927_v5, %v3926_v2  ;;  %v3928_v9 = vld [vmem:[%s5710_s3 + $0x30] sm:$0xff]  ;;  %v3929_v10 = vld [vmem:[%s5710_s3 + $0x38] sm:$0xff]  ;;  %v4649_v12 = vpack.c.bf16 %v664_v7, %v663_v6  ;;  %s5718_s25 = smov (!%p5061_p3, %s3917_s25), 1  ;;  %v3931_v14 = vld [vmem:[%s5710_s3 + $0x40] sm:$0xff] }
  0x14   : > { %4647 = vmatpush3.bf16.msra.mxu0 %v4646_v4  ;;  %v4655_v13 = vpack.c.bf16 %v3929_v10, %v3928_v9  ;;  %v3932_v15 = vld [vmem:[%s5710_s3 + $0x48] sm:$0xff]  ;;  %s3922_s23 = sshll.u32 %s5718_s25, 2  ;;  %v3936_v16 = vld [vmem:[%s5710_s3 + $0x60] sm:$0xff]  ;;  %v3933_v21 = vld [vmem:[%s5710_s3 + $0x50] sm:$0xff]  ;;  %s4072_s30 = sshll.u32 %s5718_s25, 5 }
  0x15   : > { %4653 = vmatpush3.bf16.msra.mxu1 %v4652_v8  ;;  %4648 = vmatprep.subr.bf16.mxu0 %v4917_v3  ;;  %v3937_v17 = vld [vmem:[%s5710_s3 + $0x68] sm:$0xff]  ;;  %s648_s4 = scalar_lea.vmem %s5712_s0, %s3922_s23  ;;  %v4658_v19 = vpack.c.bf16 %v3932_v15, %v3931_v14  ;;  %v3934_v22 = vld [vmem:[%s5710_s3 + $0x58] sm:$0xff]  ;;  %v3938_v23 = vld [vmem:[%s5710_s3 + $0x70] sm:$0xff]  ;;  %s5713_s23 = sld [smem:[#allocation6_spill]] }
  0x16   : > { %4654 = vmatprep.subr.bf16.mxu1 %v4917_v3  ;;  %v654_v18 = vld [vmem:[%s648_s4] sm:$0xf]  ;;  %v4664_v20 = vpack.c.bf16 %v3937_v17, %v3936_v16  ;;  %v3939_v24 = vld [vmem:[%s5710_s3 + $0x78] sm:$0xff]  ;;  %v4661_v25 = vpack.c.bf16 %v3934_v22, %v3933_v21  ;;  %v3942_v28 = vld [vmem:[%s5710_s3 + $0x88] sm:$0xff]  ;;  %s653_s24 = scalar_lea.vmem %s5698_s21, %s4072_s30 }
  0x17   : > { %v4667_v26 = vpack.c.bf16 %v3939_v24, %v3938_v23  ;;  %v3941_v27 = vld [vmem:[%s5710_s3 + $0x80] sm:$0xff]  ;;  %v3943_v30 = vld [vmem:[%s5710_s3 + $0x90] sm:$0xff]  ;;  %v3944_v31 = vld [vmem:[%s5710_s3 + $0x98] sm:$0xff] }
  0x18   : > { %4650 = vmatpush3.bf16.msra.mxu0 %v4649_v12  ;;  %v4670_v29 = vpack.c.bf16 %v3942_v28, %v3941_v27  ;;  %v4673_v32 = vpack.c.bf16 %v3944_v31, %v3943_v30  ;;  %v1044_v57 = vld [vmem:[%s5714_s28] sm:$0xff]  ;;  %v1285_v0 = vld [vmem:[%s5715_s1 + $0x8] sm:$0xff]  ;;  %v1286_v6 = vld [vmem:[%s5715_s1 + $0x10] sm:$0xff] }
  0x19   : > { %4656 = vmatpush3.bf16.msra.mxu1 %v4655_v13  ;;  %4657 = vmatprep.subr.bf16.mxu0 %v4917_v3  ;;  %v1284_v63 = vld [vmem:[%s5715_s1] sm:$0xff]  ;;  %v3955_v2 = vld [vmem:[%s5715_s1 + $0x28] sm:$0xff]  ;;  %v1287_v7 = vld [vmem:[%s5715_s1 + $0x18] sm:$0xff] }
  0x1a   : > { %4663 = vmatprep.subr.bf16.mxu1 %v4917_v3  ;;  %v3954_v1 = vld [vmem:[%s5715_s1 + $0x20] sm:$0xff]  ;;  %v4694_v4 = vpack.c.bf16 %v1285_v0, %v1284_v63  ;;  %v3956_v8 = vld [vmem:[%s5715_s1 + $0x30] sm:$0xff]  ;;  %v3957_v9 = vld [vmem:[%s5715_s1 + $0x38] sm:$0xff]  ;;  %v4697_v13 = vpack.c.bf16 %v1287_v7, %v1286_v6 }
  0x1b   : > { %4278 = vmatmul.mubr.msk.f32.vlgmr.msra.gmra.mrb[0].mxu0 %vm655_vm0, %v654_v18  ;;  %v1124_v33 = vld [vmem:[%s5713_s23] sm:$0xff]  ;;  %v1125_v34 = vld [vmem:[%s5713_s23 + $0x8] sm:$0xff]  ;;  %v1126_v36 = vld [vmem:[%s5713_s23 + $0x10] sm:$0xff]  ;;  %v4700_v5 = vpack.c.bf16 %v3955_v2, %v3954_v1  ;;  %v4703_v14 = vpack.c.bf16 %v3957_v9, %v3956_v8 }
  0x1c   : > { %4289 = vmatmul.mubr.msk.f32.vlgmr.msra.gmra.mrb[0].mxu1 %vm655_vm0, %v654_v18  ;;  %4659 = vmatpush3.bf16.msra.mxu0 %v4658_v19  ;;  %v4682_v35 = vpack.c.bf16 %v1125_v34, %v1124_v33  ;;  %v1127_v37 = vld [vmem:[%s5713_s23 + $0x18] sm:$0xff]  ;;  %v3948_v55 = vld [vmem:[%s5713_s23 + $0x20] sm:$0xff]  ;;  %v3949_v56 = vld [vmem:[%s5713_s23 + $0x28] sm:$0xff] }
  0x1d   : > { %4665 = vmatpush3.bf16.msra.mxu1 %v4664_v20  ;;  %4660 = vmatprep.subr.bf16.mxu0 %v4917_v3  ;;  %v4685_v38 = vpack.c.bf16 %v1127_v37, %v1126_v36  ;;  %v4688_v58 = vpack.c.bf16 %v3949_v56, %v3948_v55  ;;  %v3950_v60 = vld [vmem:[%s5713_s23 + $0x30] sm:$0xff]  ;;  %v3951_v61 = vld [vmem:[%s5713_s23 + $0x38] sm:$0xff]  ;;  %v3959_v15 = vld [vmem:[%s5715_s1 + $0x40] sm:$0xff] }
  0x1e   : > { %4666 = vmatprep.subr.bf16.mxu1 %v4917_v3  ;;  %4299 = vmatprep.mubr.msk.f32.mxu0 %vm4918_vm1, %v4919_v11  ;;  %v4691_v62 = vpack.c.bf16 %v3951_v61, %v3950_v60  ;;  %v3960_v16 = vld [vmem:[%s5715_s1 + $0x48] sm:$0xff]  ;;  %v3964_v17 = vld [vmem:[%s5715_s1 + $0x60] sm:$0xff]  ;;  %v3961_v21 = vld [vmem:[%s5715_s1 + $0x50] sm:$0xff] }
  0x1f   : > { %4310 = vmatprep.mubr.msk.f32.mxu1 %vm4918_vm1, %v4919_v11  ;;  %v4706_v19 = vpack.c.bf16 %v3960_v16, %v3959_v15  ;;  %v3962_v22 = vld [vmem:[%s5715_s1 + $0x58] sm:$0xff]  ;;  %v3966_v23 = vld [vmem:[%s5715_s1 + $0x70] sm:$0xff]  ;;  %v3969_v27 = vld [vmem:[%s5715_s1 + $0x80] sm:$0xff] }
  0x20   : > { %4662 = vmatpush3.bf16.msra.mxu0 %v4661_v25  ;;  %v3967_v24 = vld [vmem:[%s5715_s1 + $0x78] sm:$0xff]  ;;  %v4709_v25 = vpack.c.bf16 %v3962_v22, %v3961_v21  ;;  %v3970_v28 = vld [vmem:[%s5715_s1 + $0x88] sm:$0xff]  ;;  %v3971_v30 = vld [vmem:[%s5715_s1 + $0x90] sm:$0xff] }
  0x21   : > { %4668 = vmatpush3.bf16.msra.mxu1 %v4667_v26  ;;  %4669 = vmatprep.subr.bf16.mxu0 %v4917_v3  ;;  %v4715_v26 = vpack.c.bf16 %v3967_v24, %v3966_v23  ;;  %v3972_v31 = vld [vmem:[%s5715_s1 + $0x98] sm:$0xff]  ;;  %v1663_v33 = vld [vmem:[%s5683_s6] sm:$0xff]  ;;  %v3979_v7 = vld [vmem:[%s5685_s8 + $0x28] sm:$0xff] }
  0x22   : > { %4675 = vmatprep.subr.bf16.mxu1 %v4917_v3  ;;  %v1670_v34 = vld [vmem:[%s5684_s7] sm:$0xff]  ;;  %v3981_v16 = vld [vmem:[%s5685_s8 + $0x38] sm:$0xff]  ;;  %v3991_v22 = vld [vmem:[%s5685_s8 + $0x68] sm:$0xff] }
  0x23   : > { %4300 = vmatmul.mubr.msk.f32.vlgmr.msra.gmra.mrb[2].mxu0 %vm655_vm0, %v654_v18  ;;  %v2370_v36 = vld [vmem:[%s5688_s11] sm:$0xff] }
  0x24   : > { %4311 = vmatmul.mubr.msk.f32.vlgmr.msra.gmra.mrb[2].mxu1 %vm655_vm0, %v654_v18  ;;  %4671 = vmatpush3.bf16.msra.mxu0 %v4670_v29  ;;  %v4718_v29 = vpack.c.bf16 %v3970_v28, %v3969_v27  ;;  %v2980_v37 = vld [vmem:[%s5693_s16] sm:$0xff] }
  0x25   : > { %4672 = vmatprep.subr.bf16.mxu0 %v4917_v3  ;;  %4321 = vmatprep.mubr.msk.f32.mxu0 %vm4918_vm1, %v4919_v11  ;;  %v3978_v6 = vld [vmem:[%s5685_s8 + $0x20] sm:$0xff] }
  0x26   : > { %4334 = vmatprep.mubr.msk.f32.mxu1 %vm4918_vm1, %v4919_v11  ;;  %v4739_v8 = vpack.c.bf16 %v3979_v7, %v3978_v6 }
  0x28   : > { %4674 = vmatpush3.bf16.msra.mxu0 %v4673_v32  ;;  %v4721_v32 = vpack.c.bf16 %v3972_v31, %v3971_v30  ;;  %v3986_v30 = vld [vmem:[%s5685_s8 + $0x50] sm:$0xff]  ;;  %v3987_v31 = vld [vmem:[%s5685_s8 + $0x58] sm:$0xff] }
  0x29   : > { %4681 = vmatprep.subr.bf16.mxu0 %v4917_v3 }
  0x2b   : > { %4322 = vmatmul.mubr.msk.f32.vlgmr.msra.gmra.mrb[4].mxu0 %vm655_vm0, %v654_v18  ;;  %v3965_v18 = vld [vmem:[%s5715_s1 + $0x68] sm:$0xff] }
  0x2c   : > { %4345 = vmatprep.mubr.msk.f32.mxu0 %vm4918_vm1, %v4919_v11  ;;  %4683 = vmatpush3.bf16.msra.mxu0 %v4682_v35  ;;  %v4712_v20 = vpack.c.bf16 %v3965_v18, %v3964_v17  ;;  %v4920_v35 = vmov 0   ;;  %v3984_v18 = vld [vmem:[%s5685_s8 + $0x40] sm:$0xff] }
  0x2d   : > { %4684 = vmatprep.subr.bf16.mxu0 %v4917_v3  ;;  %4907 = vset.pattern.permute.xlu0 %v4920_v35 }
  0x2e   : > { %4908 = vset.pattern.permute.xlu1 %v4920_v35  ;;  %1674 = vperm.xlu0 %4907, %v1670_v34  }
  0x30   : > { %4686 = vmatpush3.bf16.msra.mxu0 %v4685_v38  ;;  %v2982_v38 = vld [vmem:[%s5693_s16 + $0x10] sm:$0xff] }
  0x31   : > { %4693 = vmatprep.subr.bf16.mxu0 %v4917_v3 }
  0xad   : > { %v1675_v24 = vpop.permute.xlu0 %1674 }
  0xee   : > { %v734_v39 = vpop.f32.mrb[0].mxu0 }
  0xef   : > { %739 = vst.msk [vmem:[#allocation2] sm:$0xf] %vm738_vm2, %v734_v39  ;;  %v4279_v40 = vpop.f32.mrb[1].mxu0  ;;  %v811_v41 = vpop.f32.mrb[0].mxu1  ;;  %v3798_v39 = vld [vmem:[%s5696_s19] sm:$0xff] }
  0xf0   : > { %815 = vst.msk [vmem:[#allocation2 + $0x8] sm:$0xf] %vm738_vm2, %v811_v41  ;;  %v4290_v42 = vpop.f32.mrb[1].mxu1  ;;  %v3800_v40 = vld [vmem:[%s5696_s19 + $0x10] sm:$0xff]  ;;  %v3826_v41 = vld [vmem:[%s5697_s20] sm:$0xff] }
  0xf1   : > { %v3828_v42 = vld [vmem:[%s5697_s20 + $0x10] sm:$0xff] }
  0xf6   : > { %v887_v43 = vpop.f32.mrb[2].mxu0  ;;  %v1045_v44 = vld [vmem:[#allocation2] sm:$0xff] }
  0xf7   : > { %891 = vst.msk [vmem:[#allocation2 + $0x10] sm:$0xf] %vm738_vm2, %v887_v43  ;;  %v4301_v45 = vpop.f32.mrb[3].mxu0  ;;  %v963_v46 = vpop.f32.mrb[2].mxu1  ;;  %v1046_v47 = vld [vmem:[#allocation2 + $0x8] sm:$0xff]  ;;  %v1765_v43 = vld [vmem:[%s5685_s8] sm:$0xff] }
  0xf8   : > { %967 = vst.msk [vmem:[#allocation2 + $0x18] sm:$0xf] %vm738_vm2, %v963_v46  ;;  %v4312_v48 = vpop.f32.mrb[3].mxu1  ;;  %v4676_v49 = vpack.c.bf16 %v1046_v47, %v1045_v44  ;;  %v1766_v44 = vld [vmem:[%s5685_s8 + $0x8] sm:$0xff] }
  0xf9   : > { %v4731_v45 = vpack.c.bf16 %v1766_v44, %v1765_v43  ;;  %v1282_v43 = vld [vmem:[%s5716_s27] sm:$0xff] }
  0xfa   : > { %4677 = vmatpush3.bf16.msra.mxu1 %v4676_v49  ;;  %v2180_v44 = vld [vmem:[%s5686_s9] sm:$0xff] }
  0xfb   : > { %4678 = vmatprep.subr.bf16.mxu1 %v4917_v3 }
  0xfe   : > { %v1039_v50 = vpop.f32.mrb[4].mxu0  ;;  %v1047_v51 = vld [vmem:[#allocation2 + $0x10] sm:$0xff] }
  0xff   : > { %1043 = vst.msk [vmem:[#allocation2 + $0x20] sm:$0xf] %vm738_vm2, %v1039_v50  ;;  %v4323_v52 = vpop.f32.mrb[5].mxu0  ;;  %v1048_v53 = vld [vmem:[#allocation2 + $0x18] sm:$0xff] }
 0x100   : > { %v4679_v54 = vpack.c.bf16 %v1048_v53, %v1047_v51 }
 0x102   : > { %4680 = vmatpush3.bf16.msra.mxu1 %v4679_v54 }
 0x103   : > { %4332 = vmatprep.subr.mxu1 %v4919_v11 }
 0x106   : > { %v1049_v59 = vld [vmem:[#allocation2 + $0x20] sm:$0xff] }
 0x107   : > { %4333 = vmatpush3.msra.mxu1 %v1049_v59 }
 0x108   : > { %4335 = vmatmul.mubr.msk.f32.vlgmr.msra.gmra.mrb[4].mxu1 %vm1050_vm3, %v1044_v57  ;;  %4687 = vmatprep.subr.bf16.mxu1 %v4917_v3 }
 0x109   : > { %4689 = vmatpush3.bf16.msra.mxu1 %v4688_v58  ;;  %4356 = vmatprep.mubr.msk.f32.mxu1 %vm4918_vm1, %v4919_v11 }
 0x10a   : > { %4690 = vmatprep.subr.bf16.mxu1 %v4917_v3 }
 0x10d   : > { %4692 = vmatpush3.bf16.msra.mxu1 %v4691_v62 }
 0x10e   : > { %4699 = vmatprep.subr.bf16.mxu1 %v4917_v3 }
 0x1db   : > { %v1120_v10 = vpop.f32.mrb[4].mxu1 }
 0x1dc   : > { %v4336_v12 = vpop.f32.mrb[5].mxu1  ;;  %4346 = vmatmul.mubr.msk.f32.vlgmr.msra.gmra.mrb[6].mxu0 %vm655_vm0, %v1120_v10  ;;  %4357 = vmatmul.mubr.msk.f32.vlgmr.msra.gmra.mrb[6].mxu1 %vm655_vm0, %v1120_v10 }
 0x1dd   : > { %4695 = vmatpush3.bf16.msra.mxu0 %v4694_v4  ;;  %4701 = vmatpush3.bf16.msra.mxu1 %v4700_v5  ;;  %v1767_v12 = vld [vmem:[%s5685_s8 + $0x10] sm:$0xff] }
 0x1de   : > { %4696 = vmatprep.subr.bf16.mxu0 %v4917_v3  ;;  %4702 = vmatprep.subr.bf16.mxu1 %v4917_v3 }
 0x1df   : > { %4367 = vmatprep.mubr.msk.f32.mxu0 %vm4918_vm1, %v4919_v11  ;;  %4378 = vmatprep.mubr.msk.f32.mxu1 %vm4918_vm1, %v4919_v11 }
 0x1e1   : > { %4698 = vmatpush3.bf16.msra.mxu0 %v4697_v13  ;;  %4704 = vmatpush3.bf16.msra.mxu1 %v4703_v14  ;;  %v1768_v13 = vld [vmem:[%s5685_s8 + $0x18] sm:$0xff]  ;;  %v3980_v14 = vld [vmem:[%s5685_s8 + $0x30] sm:$0xff] }
 0x1e2   : > { %4705 = vmatprep.subr.bf16.mxu0 %v4917_v3  ;;  %4711 = vmatprep.subr.bf16.mxu1 %v4917_v3  ;;  %v4735_v15 = vpack.c.bf16 %v1768_v13, %v1767_v12  ;;  %v4743_v17 = vpack.c.bf16 %v3981_v16, %v3980_v14 }
 0x1e4   : > { %4368 = vmatmul.mubr.msk.f32.vlgmr.msra.gmra.mrb[8].mxu0 %vm655_vm0, %v1120_v10  ;;  %4379 = vmatmul.mubr.msk.f32.vlgmr.msra.gmra.mrb[8].mxu1 %vm655_vm0, %v1120_v10 }
 0x1e5   : > { %4707 = vmatpush3.bf16.msra.mxu0 %v4706_v19  ;;  %4713 = vmatpush3.bf16.msra.mxu1 %v4712_v20  ;;  %v3985_v19 = vld [vmem:[%s5685_s8 + $0x48] sm:$0xff]  ;;  %v3990_v20 = vld [vmem:[%s5685_s8 + $0x60] sm:$0xff] }
 0x1e6   : > { %4708 = vmatprep.subr.bf16.mxu0 %v4917_v3  ;;  %4714 = vmatprep.subr.bf16.mxu1 %v4917_v3  ;;  %v4747_v21 = vpack.c.bf16 %v3985_v19, %v3984_v18  ;;  %v4755_v23 = vpack.c.bf16 %v3991_v22, %v3990_v20  ;;  %v2181_v18 = vld [vmem:[%s5686_s9 + $0x8] sm:$0xff]  ;;  %v2386_v20 = vld [vmem:[%s5689_s12] sm:$0xff] }
 0x1e7   : > { %4389 = vmatprep.mubr.msk.f32.mxu0 %vm4918_vm1, %v4919_v11  ;;  %4400 = vmatprep.mubr.msk.f32.mxu1 %vm4918_vm1, %v4919_v11 }
 0x1e9   : > { %4710 = vmatpush3.bf16.msra.mxu0 %v4709_v25  ;;  %4716 = vmatpush3.bf16.msra.mxu1 %v4715_v26 }
 0x1ea   : > { %4717 = vmatprep.subr.bf16.mxu0 %v4917_v3 }
 0x1ec   : > { %4390 = vmatmul.mubr.msk.f32.vlgmr.msra.gmra.mrb[10].mxu0 %vm655_vm0, %v1120_v10  ;;  %4401 = vmatmul.mubr.msk.f32.vlgmr.msra.gmra.mrb[10].mxu1 %vm655_vm0, %v1120_v10 }
 0x1ed   : > { %4719 = vmatpush3.bf16.msra.mxu0 %v4718_v29  ;;  %4411 = vmatprep.mubr.msk.f32.mxu0 %vm4918_vm1, %v4919_v11  ;;  %v1671_v11 = vld [vmem:[%s5684_s7 + $0x8] sm:$0xff] }
 0x1ee   : > { %4720 = vmatprep.subr.bf16.mxu0 %v4917_v3  ;;  %4424 = vmatprep.mubr.msk.f32.mxu1 %vm1050_vm3, %v1663_v33  ;;  %v3993_v33 = vld [vmem:[%s5685_s8 + $0x78] sm:$0xff] }
 0x1ef   : > { %1679 = vperm.xlu0 %4907, %v1671_v11   ;;  %v4751_v11 = vpack.c.bf16 %v3987_v31, %v3986_v30 }
 0x1f1   : > { %4722 = vmatpush3.bf16.msra.mxu0 %v4721_v32  ;;  %v3992_v32 = vld [vmem:[%s5685_s8 + $0x70] sm:$0xff] }
 0x1f2   : > { %4732 = vmatprep.subr.bf16.mxu0 %v4731_v45 }
 0x1f3   : > { %2374 = vperm.xlu0 %4907, %v2370_v36   ;;  %v4759_v36 = vpack.c.bf16 %v3993_v33, %v3992_v32  ;;  %v2561_v33 = vld [vmem:[%s5691_s14] sm:$0xff] }
 0x1f4   : > { %4412 = vmatmul.mubr.msk.f32.vlgmr.msra.gmra.mrb[12].mxu0 %vm655_vm0, %v1120_v10  ;;  %v1664_v10 = vld [vmem:[%s5683_s6 + $0x8] sm:$0xff] }
 0x1f5   : > { %4734 = vmatpush3.bf16.msra.mxu0 %v4731_v45  ;;  %v1283_v45 = vld [vmem:[%s5716_s27 + $0x8] sm:$0xff] }
 0x1f6   : > { %4736 = vmatprep.subr.bf16.mxu0 %v4735_v15 }
 0x1f7   : > { %2986 = vperm.xlu0 %4907, %v2980_v37   ;;  %v3996_v37 = vld [vmem:[%s5685_s8 + $0x80] sm:$0xff] }
 0x1f9   : > { %4738 = vmatpush3.bf16.msra.mxu0 %v4735_v15 }
 0x1fa   : > { %4748 = vmatprep.subr.bf16.mxu0 %v4747_v21 }
 0x1fb   : > { %2996 = vperm.xlu0 %4907, %v2982_v38   ;;  %v3997_v38 = vld [vmem:[%s5685_s8 + $0x88] sm:$0xff] }
 0x1ff   : > { %3804 = vperm.xlu0 %4907, %v3798_v39   ;;  %v4763_v39 = vpack.c.bf16 %v3997_v38, %v3996_v37 }
 0x203   : > { %3814 = vperm.xlu0 %4907, %v3800_v40   ;;  %v3998_v40 = vld [vmem:[%s5685_s8 + $0x90] sm:$0xff] }
 0x207   : > { %3832 = vperm.xlu0 %4907, %v3826_v41   ;;  %v3999_v41 = vld [vmem:[%s5685_s8 + $0x98] sm:$0xff] }
 0x20b   : > { %3842 = vperm.xlu0 %4907, %v3828_v42   ;;  %v4767_v42 = vpack.c.bf16 %v3999_v41, %v3998_v40  ;;  %v4014_v40 = vld [vmem:[%s5691_s14 + $0x10] sm:$0xff]  ;;  %v4015_v41 = vld [vmem:[%s5691_s14 + $0x18] sm:$0xff] }
 0x26e   : > { %v1680_v25 = vpop.permute.xlu0 %1679 }
 0x2af   : > { %v1197_v46 = vpop.f32.mrb[6].mxu0  ;;  %v1274_v47 = vpop.f32.mrb[6].mxu1 }
 0x2b0   : > { %1202 = vst.msk [vmem:[#allocation2] sm:$0xff] %vm1201_vm4, %v1197_v46  ;;  %1278 = vst.msk [vmem:[#allocation2 + $0x8] sm:$0xff] %vm1201_vm4, %v1274_v47  ;;  %v4347_v48 = vpop.f32.mrb[7].mxu0  ;;  %v4358_v49 = vpop.f32.mrb[7].mxu1  ;;  %v2356_v46 = vld [vmem:[%s5687_s10] sm:$0xff]  ;;  %v2357_v47 = vld [vmem:[%s5687_s10 + $0x8] sm:$0xff] }
 0x2b1   : > { %2360 = vperm.xlu1 %4908, %v2356_v46   ;;  %v2371_v48 = vld [vmem:[%s5688_s11 + $0x8] sm:$0xff]  ;;  %v4803_v46 = vpack.c.bf16 %v4015_v41, %v4014_v40 }
 0x2b2   : > { %v2981_v49 = vld [vmem:[%s5693_s16 + $0x8] sm:$0xff] }
 0x2b5   : > { %2365 = vperm.xlu1 %4908, %v2357_v47  }
 0x2b7   : > { %v1279_v50 = vld [vmem:[#allocation2] sm:$0xff]  ;;  %v1354_v51 = vpop.f32.mrb[8].mxu0  ;;  %v1280_v52 = vld [vmem:[#allocation2 + $0x8] sm:$0xff]  ;;  %v1430_v53 = vpop.f32.mrb[8].mxu1 }
 0x2b8   : > { %1358 = vst.msk [vmem:[#allocation2] sm:$0xff] %vm655_vm0, %v1354_v51  ;;  %1434 = vst.msk [vmem:[#allocation2 + $0x8] sm:$0xff] %vm655_vm0, %v1430_v53  ;;  %v4369_v54 = vpop.f32.mrb[9].mxu0  ;;  %v4380_v55 = vpop.f32.mrb[9].mxu1  ;;  %v5324_v56 = vmax.f32 %v1279_v50, %v1280_v52  ;;  %v2983_v50 = vld [vmem:[%s5693_s16 + $0x18] sm:$0xff]  ;;  %v3799_v51 = vld [vmem:[%s5696_s19 + $0x8] sm:$0xff] }
 0x2b9   : > { %2379 = vperm.xlu1 %4908, %v2371_v48   ;;  %v3801_v52 = vld [vmem:[%s5696_s19 + $0x18] sm:$0xff]  ;;  %v3827_v53 = vld [vmem:[%s5697_s20 + $0x8] sm:$0xff]  ;;  %v4018_v48 = vld [vmem:[%s5691_s14 + $0x20] sm:$0xff] }
 0x2ba   : > { %v3829_v54 = vld [vmem:[%s5697_s20 + $0x18] sm:$0xff] }
 0x2bd   : > { %2991 = vperm.xlu1 %4908, %v2981_v49   ;;  %v4019_v49 = vld [vmem:[%s5691_s14 + $0x28] sm:$0xff] }
 0x2bf   : > { %v1506_v57 = vpop.f32.mrb[10].mxu0  ;;  %v1582_v58 = vpop.f32.mrb[10].mxu1  ;;  %v1665_v59 = vld [vmem:[#allocation2] sm:$0xff]  ;;  %v1666_v60 = vld [vmem:[#allocation2 + $0x8] sm:$0xff] }
 0x2c0   : > { %1510 = vst.msk [vmem:[#allocation2 + $0x10] sm:$0xff] %vm655_vm0, %v1506_v57  ;;  %1586 = vst.msk [vmem:[#allocation2 + $0x18] sm:$0xff] %vm655_vm0, %v1582_v58  ;;  %v4391_v61 = vpop.f32.mrb[11].mxu0  ;;  %v4402_v62 = vpop.f32.mrb[11].mxu1  ;;  %v4723_v63 = vpack.c.bf16 %v1666_v60, %v1665_v59 }
 0x2c1   : > { %3001 = vperm.xlu1 %4908, %v2983_v50  }
 0x2c2   : > { %4724 = vmatprep.subr.bf16.mxu1 %v4723_v63 }
 0x2c3   : > { %4726 = vmatpush3.bf16.msra.mxu1 %v4723_v63 }
 0x2c5   : > { %3809 = vperm.xlu1 %4908, %v3799_v51   ;;  %v4807_v51 = vpack.c.bf16 %v4019_v49, %v4018_v48  ;;  %v4045_v48 = vld [vmem:[%s5694_s17 + $0x28] sm:$0xff] }
 0x2c7   : > { %v1658_v0 = vpop.f32.mrb[12].mxu0  ;;  %v1667_v1 = vld [vmem:[#allocation2 + $0x10] sm:$0xff]  ;;  %v1668_v2 = vld [vmem:[#allocation2 + $0x18] sm:$0xff] }
 0x2c8   : > { %1662 = vst.msk [vmem:[#allocation2 + $0x20] sm:$0xff] %vm655_vm0, %v1658_v0  ;;  %v4413_v4 = vpop.f32.mrb[13].mxu0  ;;  %v4727_v5 = vpack.c.bf16 %v1668_v2, %v1667_v1 }
 0x2c9   : > { %3819 = vperm.xlu1 %4908, %v3801_v52   ;;  %v4022_v52 = vld [vmem:[%s5691_s14 + $0x30] sm:$0xff] }
 0x2ca   : > { %4728 = vmatprep.subr.bf16.mxu1 %v4727_v5 }
 0x2cb   : > { %4730 = vmatpush3.bf16.msra.mxu1 %v4727_v5 }
 0x2cd   : > { %3837 = vperm.xlu1 %4908, %v3827_v53   ;;  %v4023_v53 = vld [vmem:[%s5691_s14 + $0x38] sm:$0xff] }
 0x2cf   : > { %v1669_v9 = vld [vmem:[#allocation2 + $0x20] sm:$0xff] }
 0x2d0   : > { %4422 = vmatprep.subr.mxu1 %v1669_v9 }
 0x2d1   : > { %4423 = vmatpush3.msra.mxu1 %v1669_v9  ;;  %3847 = vperm.xlu1 %4908, %v3829_v54   ;;  %v4811_v54 = vpack.c.bf16 %v4023_v53, %v4022_v52 }
 0x2d2   : > { %4425 = vmatmul.mubr.msk.f32.vlgmr.msra.gmra.mrb[12].mxu1 %vm1050_vm3, %v1664_v10  ;;  %4740 = vmatprep.subr.bf16.mxu1 %v4739_v8 }
 0x2d3   : > { %4742 = vmatpush3.bf16.msra.mxu1 %v4739_v8 }
 0x2d4   : > { %4744 = vmatprep.subr.bf16.mxu1 %v4743_v17 }
 0x2d7   : > { %4746 = vmatpush3.bf16.msra.mxu1 %v4743_v17 }
 0x2d8   : > { %4756 = vmatprep.subr.bf16.mxu1 %v4755_v23 }
 0x330   : > { %v2361_v30 = vpop.permute.xlu1 %2360 }
 0x334   : > { %v2366_v31 = vpop.permute.xlu1 %2365 }
 0x3a5   : > { %v4426_v26 = vpop.f32.mrb[12].mxu1 }
 0x3a6   : > { %v1760_v27 = vadd.f32 %v4426_v26, %v1680_v25  ;;  %v1754_v28 = vpop.f32.mrb[13].mxu1  ;;  %v4009_v25 = vld [vmem:[%s5689_s12 + $0x18] sm:$0xff] }
 0x3a7   : > { %v1755_v29 = vadd.f32 %v1754_v28, %v1675_v24  ;;  %v4008_v24 = vld [vmem:[%s5689_s12 + $0x10] sm:$0xff]  ;;  %v4027_v28 = vld [vmem:[%s5691_s14 + $0x48] sm:$0xff] }
 0x3a8   : > { %v1764_v35 = vmax.f32 %v1760_v27, 0.0  ;;  %v4795_v26 = vpack.c.bf16 %v4009_v25, %v4008_v24  ;;  %v4026_v27 = vld [vmem:[%s5691_s14 + $0x40] sm:$0xff] }
 0x3a9   : > { %v1763_v34 = vmax.f32 %v1755_v29, 0.0  ;;  %v4815_v29 = vpack.c.bf16 %v4027_v28, %v4026_v27 }
 0x3ab   : > { %4435 = vmatprep.mubr.msk.f32.mxu0 %vm655_vm0, %v1763_v34  ;;  %4446 = vmatprep.mubr.msk.f32.mxu1 %vm655_vm0, %v1763_v34 }
 0x3ac   : > { %4436 = vmatmul.mubr.msk.f32.vlgmr.msra.gmra.mrb[14].mxu0 %vm655_vm0, %v1764_v35  ;;  %4447 = vmatmul.mubr.msk.f32.vlgmr.msra.gmra.mrb[14].mxu1 %vm655_vm0, %v1764_v35 }
 0x3ad   : > { %4750 = vmatpush3.bf16.msra.mxu0 %v4747_v21  ;;  %4758 = vmatpush3.bf16.msra.mxu1 %v4755_v23  ;;  %v2387_v21 = vld [vmem:[%s5689_s12 + $0x8] sm:$0xff] }
 0x3ae   : > { %4457 = vmatprep.mubr.msk.f32.mxu0 %vm655_vm0, %v1763_v34  ;;  %4468 = vmatprep.mubr.msk.f32.mxu1 %vm655_vm0, %v1763_v34  ;;  %v4791_v22 = vpack.c.bf16 %v2387_v21, %v2386_v20 }
 0x3af   : > { %4752 = vmatprep.subr.bf16.mxu0 %v4751_v11  ;;  %4760 = vmatprep.subr.bf16.mxu1 %v4759_v36 }
 0x3b1   : > { %4754 = vmatpush3.bf16.msra.mxu0 %v4751_v11  ;;  %4762 = vmatpush3.bf16.msra.mxu1 %v4759_v36 }
 0x3b2   : > { %4764 = vmatprep.subr.bf16.mxu0 %v4763_v39 }
 0x3b4   : > { %4458 = vmatmul.mubr.msk.f32.vlgmr.msra.gmra.mrb[16].mxu0 %vm655_vm0, %v1764_v35  ;;  %4469 = vmatmul.mubr.msk.f32.vlgmr.msra.gmra.mrb[16].mxu1 %vm655_vm0, %v1764_v35 }
 0x3b5   : > { %4766 = vmatpush3.bf16.msra.mxu0 %v4763_v39  ;;  %4479 = vmatprep.mubr.msk.f32.mxu0 %vm655_vm0, %v1763_v34  ;;  %v2562_v34 = vld [vmem:[%s5691_s14 + $0x8] sm:$0xff] }
 0x3b6   : > { %4768 = vmatprep.subr.bf16.mxu0 %v4767_v42  ;;  %4502 = vmatprep.mubr.msk.f32.mxu1 %vm2192_vm6, %v2180_v44  ;;  %v4799_v38 = vpack.c.bf16 %v2562_v34, %v2561_v33  ;;  %v2967_v33 = vld [vmem:[%s5692_s15 + $0x8] sm:$0xff]  ;;  %v2968_v34 = vld [vmem:[%s5692_s15 + $0x10] sm:$0xff] }
 0x3b9   : > { %4770 = vmatpush3.bf16.msra.mxu0 %v4767_v42  ;;  %v2375_v42 = vpop.permute.xlu0 %2374 }
 0x3ba   : > { %4505 = vmatprep.subr.mxu0 %v5324_v56 }
 0x3bc   : > { %4480 = vmatmul.mubr.msk.f32.vlgmr.msra.gmra.mrb[18].mxu0 %vm655_vm0, %v1764_v35 }
 0x3bd   : > { %4506 = vmatpush3.msra.mxu0 %v5324_v56  ;;  %4507 = vmatprep.mubr.msk.f32.mxu0 %vm2274_vm5, %v1282_v43  ;;  %v2380_v43 = vpop.permute.xlu1 %2379 }
 0x3be   : > { %4792 = vmatprep.subr.bf16.mxu0 %v4791_v22 }
 0x3c0   : > { %4508 = vmatmul.mubr.msk.f32.vlgmr.msra.gmra.mrb[20].mxu0 %vm2274_vm5, %v1283_v45 }
 0x3c1   : > { %4794 = vmatpush3.bf16.msra.mxu0 %v4791_v22  ;;  %v2992_v41 = vpop.permute.xlu1 %2991 }
 0x3c2   : > { %4796 = vmatprep.subr.bf16.mxu0 %v4795_v26 }
 0x3c5   : > { %v3002_v49 = vpop.permute.xlu1 %3001 }
 0x47f   : > { %v4437_v55 = vpop.f32.mrb[14].mxu0  ;;  %v4448_v56 = vpop.f32.mrb[14].mxu1 }
 0x480   : > { %1851 = vst.msk [vmem:[#allocation2 + $0x8] sm:$0xff] %vm1201_vm4, %v4437_v55  ;;  %1933 = vst.msk [vmem:[#allocation2 + $0x18] sm:$0xff] %vm1201_vm4, %v4448_v56  ;;  %v1841_v57 = vpop.f32.mrb[15].mxu0  ;;  %v1923_v58 = vpop.f32.mrb[15].mxu1  ;;  %v2966_v55 = vld [vmem:[%s5692_s15] sm:$0xff] }
 0x481   : > { %1850 = vst.msk [vmem:[#allocation2] sm:$0xff] %vm1201_vm4, %v1841_v57  ;;  %1932 = vst.msk [vmem:[#allocation2 + $0x10] sm:$0xff] %vm1201_vm4, %v1923_v58 }
 0x487   : > { %v4459_v59 = vpop.f32.mrb[16].mxu0  ;;  %v4470_v60 = vpop.f32.mrb[16].mxu1  ;;  %v2183_v61 = vld [vmem:[#allocation2 + $0x8] sm:$0xff]  ;;  %v2185_v2 = vld [vmem:[#allocation2 + $0x18] sm:$0xff] }
 0x488   : > { %2015 = vst.msk [vmem:[#allocation2 + $0x28] sm:$0xff] %vm1201_vm4, %v4459_v59  ;;  %2097 = vst.msk [vmem:[#allocation2 + $0x38] sm:$0xff] %vm1201_vm4, %v4470_v60  ;;  %v2005_v62 = vpop.f32.mrb[17].mxu0  ;;  %v2087_v63 = vpop.f32.mrb[17].mxu1  ;;  %v2182_v0 = vld [vmem:[#allocation2] sm:$0xff]  ;;  %v2184_v1 = vld [vmem:[#allocation2 + $0x10] sm:$0xff] }
 0x489   : > { %2014 = vst.msk [vmem:[#allocation2 + $0x20] sm:$0xff] %vm1201_vm4, %v2005_v62  ;;  %2096 = vst.msk [vmem:[#allocation2 + $0x30] sm:$0xff] %vm1201_vm4, %v2087_v63  ;;  %v4771_v4 = vpack.c.bf16 %v2183_v61, %v2182_v0  ;;  %v4775_v5 = vpack.c.bf16 %v2185_v2, %v2184_v1 }
 0x48b   : > { %4772 = vmatprep.subr.bf16.mxu1 %v4771_v4 }
 0x48c   : > { %4774 = vmatpush3.bf16.msra.mxu1 %v4771_v4 }
 0x48d   : > { %4776 = vmatprep.subr.bf16.mxu1 %v4775_v5 }
 0x48f   : > { %v4481_v6 = vpop.f32.mrb[18].mxu0  ;;  %v2187_v7 = vld [vmem:[#allocation2 + $0x28] sm:$0xff]  ;;  %v2189_v12 = vld [vmem:[#allocation2 + $0x38] sm:$0xff] }
 0x490   : > { %2179 = vst.msk [vmem:[#allocation2 + $0x48] sm:$0xff] %vm1201_vm4, %v4481_v6  ;;  %v2169_v8 = vpop.f32.mrb[19].mxu0  ;;  %4778 = vmatpush3.bf16.msra.mxu1 %v4775_v5  ;;  %v2186_v9 = vld [vmem:[#allocation2 + $0x20] sm:$0xff]  ;;  %v2188_v10 = vld [vmem:[#allocation2 + $0x30] sm:$0xff] }
 0x491   : > { %2178 = vst.msk [vmem:[#allocation2 + $0x40] sm:$0xff] %vm1201_vm4, %v2169_v8  ;;  %v4779_v13 = vpack.c.bf16 %v2187_v7, %v2186_v9  ;;  %v4783_v14 = vpack.c.bf16 %v2189_v12, %v2188_v10 }
 0x493   : > { %4780 = vmatprep.subr.bf16.mxu1 %v4779_v13  ;;  %v4509_v19 = vpop.f32.mrb[20].mxu0 }
 0x494   : > { %4782 = vmatpush3.bf16.msra.mxu1 %v4779_v13  ;;  %v2347_v23 = vpop.f32.mrb[21].mxu0 }
 0x495   : > { %4784 = vmatprep.subr.bf16.mxu1 %v4783_v14 }
 0x497   : > { %v2191_v15 = vld [vmem:[#allocation2 + $0x48] sm:$0xff] }
 0x498   : > { %4786 = vmatpush3.bf16.msra.mxu1 %v4783_v14  ;;  %v2190_v16 = vld [vmem:[#allocation2 + $0x40] sm:$0xff] }
 0x499   : > { %v4787_v17 = vpack.c.bf16 %v2191_v15, %v2190_v16 }
 0x49b   : > { %4788 = vmatprep.subr.bf16.mxu1 %v4787_v17 }
 0x49c   : > { %4790 = vmatpush3.bf16.msra.mxu1 %v4787_v17 }
 0x49d   : > { %4816 = vmatprep.subr.bf16.mxu1 %v4815_v29 }
 0x49f   : > { %4503 = vmatmul.mubr.msk.f32.vlgmr.msra.gmra.mrb[18].mxu1 %vm2192_vm6, %v2181_v18 }
 0x4a0   : > { %4818 = vmatpush3.bf16.msra.mxu1 %v4815_v29  ;;  %v3105_v29 = vld [vmem:[%s5694_s17] sm:$0xff] }
 0x572   : > { %v4504_v32 = vpop.f32.mrb[18].mxu1 }
 0x573   : > { %v2353_v35 = vadd.f32 %v4509_v19, %v4504_v32  ;;  %v2265_v11 = vpop.f32.mrb[19].mxu1 }
 0x574   : > { %v2348_v36 = vadd.f32 %v2347_v23, %v2265_v11  ;;  %v4050_v11 = vld [vmem:[%s5694_s17 + $0x30] sm:$0xff] }
 0x575   : > { %v2369_v37 = vmul.f32 %v2366_v31, %v2353_v35 }
 0x576   : > { %v2368_v39 = vmul.f32 %v2361_v30, %v2348_v36  ;;  %4514 = vmatprep.mubr.msk.f32.mxu0 %vm1201_vm4, %v2348_v36  ;;  %v3106_v30 = vld [vmem:[%s5694_s17 + $0x8] sm:$0xff] }
 0x577   : > { %4515 = vmatmul.mubr.msk.f32.vlgmr.msra.gmra.mrb[22].mxu0 %vm1201_vm4, %v2353_v35  ;;  %v2383_v44 = vadd.f32 %v2380_v43, %v2369_v37  ;;  %v4839_v32 = vpack.c.bf16 %v3106_v30, %v3105_v29 }
 0x578   : > { %v2382_v45 = vadd.f32 %v2375_v42, %v2368_v39  ;;  %4798 = vmatpush3.bf16.msra.mxu0 %v4795_v26  ;;  %4521 = vmatprep.mubr.msk.f32.mxu0 %vm1201_vm4, %v2348_v36  ;;  %v4051_v36 = vld [vmem:[%s5694_s17 + $0x38] sm:$0xff]  ;;  %v2987_v42 = vpop.permute.xlu0 %2986 }
 0x579   : > { %4800 = vmatprep.subr.bf16.mxu0 %v4799_v38  ;;  %v2385_v50 = vmax.f32 %v2383_v44, 0.0  ;;  %v4851_v37 = vpack.c.bf16 %v4051_v36, %v4050_v11  ;;  %v4039_v39 = vld [vmem:[%s5694_s17 + $0x18] sm:$0xff] }
 0x57a   : > { %v2384_v47 = vmax.f32 %v2382_v45, 0.0 }
 0x57b   : > { %4522 = vmatmul.mubr.msk.f32.vlgmr.msra.gmra.mrb[24].mxu0 %vm1201_vm4, %v2353_v35  ;;  %v2969_v35 = vld [vmem:[%s5692_s15 + $0x18] sm:$0xff] }
 0x57c   : > { %4802 = vmatpush3.bf16.msra.mxu0 %v4799_v38  ;;  %4528 = vmatprep.mubr.msk.f32.mxu0 %vm1201_vm4, %v2384_v47  ;;  %v4038_v38 = vld [vmem:[%s5694_s17 + $0x10] sm:$0xff]  ;;  %v2997_v52 = vpop.permute.xlu0 %2996 }
 0x57d   : > { %4556 = vmatprep.mubr.msk.f32.mxu1 %vm1201_vm4, %v2384_v47  ;;  %4804 = vmatprep.subr.bf16.mxu0 %v4803_v46  ;;  %v4843_v40 = vpack.c.bf16 %v4039_v39, %v4038_v38 }
 0x57e   : > { %4557 = vmatmul.mubr.msk.f32.vlgmr.msra.gmra.mrb[20].mxu1 %vm1201_vm4, %v2385_v50 }
 0x57f   : > { %4529 = vmatmul.mubr.msk.f32.vlgmr.msra.gmra.mrb[26].mxu0 %vm1201_vm4, %v2385_v50  ;;  %4579 = vmatprep.mubr.msk.f32.mxu1 %vm2192_vm6, %v2966_v55 }
 0x580   : > { %4806 = vmatpush3.bf16.msra.mxu0 %v4803_v46  ;;  %4535 = vmatprep.mubr.msk.f32.mxu0 %vm1201_vm4, %v2384_v47 }
 0x581   : > { %4808 = vmatprep.subr.bf16.mxu0 %v4807_v51 }
 0x583   : > { %4536 = vmatmul.mubr.msk.f32.vlgmr.msra.gmra.mrb[28].mxu0 %vm1201_vm4, %v2385_v50 }
 0x584   : > { %4810 = vmatpush3.bf16.msra.mxu0 %v4807_v51  ;;  %4542 = vmatprep.mubr.msk.f32.mxu0 %vm1201_vm4, %v2384_v47 }
 0x585   : > { %4812 = vmatprep.subr.bf16.mxu0 %v4811_v54 }
 0x587   : > { %4543 = vmatmul.mubr.msk.f32.vlgmr.msra.gmra.mrb[30].mxu0 %vm1201_vm4, %v2385_v50 }
 0x588   : > { %4814 = vmatpush3.bf16.msra.mxu0 %v4811_v54  ;;  %4549 = vmatprep.mubr.msk.f32.mxu0 %vm1201_vm4, %v2384_v47  ;;  %v4044_v47 = vld [vmem:[%s5694_s17 + $0x20] sm:$0xff] }
 0x589   : > { %4852 = vmatprep.subr.bf16.mxu0 %v4851_v37 }
 0x58b   : > { %4550 = vmatmul.mubr.msk.f32.vlgmr.msra.gmra.mrb[32].mxu0 %vm1201_vm4, %v2385_v50 }
 0x58c   : > { %4854 = vmatpush3.bf16.msra.mxu0 %v4851_v37 }
 0x58d   : > { %4859 = vmatprep.subr.bf16.mxu0 %v4917_v3 }
 0x64a   : > { %v4516_v56 = vpop.f32.mrb[22].mxu0 }
 0x64b   : > { %2470 = vst.msk [vmem:[#allocation2 + $0x8] sm:$0xff] %vm2274_vm5, %v4516_v56  ;;  %v2460_v57 = vpop.f32.mrb[23].mxu0  ;;  %v4847_v56 = vpack.c.bf16 %v4045_v48, %v4044_v47 }
 0x64c   : > { %2469 = vst.msk [vmem:[#allocation2] sm:$0xff] %vm2274_vm5, %v2460_v57 }
 0x64e   : > { %v4523_v58 = vpop.f32.mrb[24].mxu0 }
 0x64f   : > { %2550 = vst.msk [vmem:[#allocation2 + $0x18] sm:$0xff] %vm2274_vm5, %v4523_v58  ;;  %v2540_v59 = vpop.f32.mrb[25].mxu0 }
 0x650   : > { %2549 = vst.msk [vmem:[#allocation2 + $0x10] sm:$0xff] %vm2274_vm5, %v2540_v59 }
 0x651   : > { %v4558_v60 = vpop.f32.mrb[20].mxu1 }
 0x652   : > { %2965 = vst.msk [vmem:[#allocation2 + $0x48] sm:$0xff] %vm1201_vm4, %v4558_v60  ;;  %v2955_v61 = vpop.f32.mrb[21].mxu1  ;;  %v2552_v62 = vld [vmem:[#allocation2 + $0x8] sm:$0xff]  ;;  %v4530_v63 = vpop.f32.mrb[26].mxu0  ;;  %v4056_v60 = vld [vmem:[%s5694_s17 + $0x40] sm:$0xff] }
 0x653   : > { %2964 = vst.msk [vmem:[#allocation2 + $0x40] sm:$0xff] %vm1201_vm4, %v2955_v61  ;;  %2645 = vst.msk [vmem:[#allocation2 + $0x8] sm:$0xff] %vm1201_vm4, %v4530_v63  ;;  %v2551_v0 = vld [vmem:[#allocation2] sm:$0xff]  ;;  %v2635_v1 = vpop.f32.mrb[27].mxu0  ;;  %v4057_v61 = vld [vmem:[%s5694_s17 + $0x48] sm:$0xff] }
 0x654   : > { %2644 = vst.msk [vmem:[#allocation2] sm:$0xff] %vm1201_vm4, %v2635_v1  ;;  %v2557_v63 = vld [vmem:[%s5690_s13] sm:$0xff]  ;;  %v2558_v1 = vld [vmem:[%s5690_s13 + $0x8] sm:$0xff] }
 0x656   : > { %v2554_v2 = vld [vmem:[#allocation2 + $0x18] sm:$0xff]  ;;  %v4537_v4 = vpop.f32.mrb[28].mxu0 }
 0x657   : > { %2725 = vst.msk [vmem:[#allocation2 + $0x18] sm:$0xff] %vm1201_vm4, %v4537_v4  ;;  %v2553_v5 = vld [vmem:[#allocation2 + $0x10] sm:$0xff]  ;;  %v2715_v6 = vpop.f32.mrb[29].mxu0  ;;  %v2556_v7 = vmax.f32 %v2552_v62, %v2554_v2  ;;  %v4855_v62 = vpack.c.bf16 %v4057_v61, %v4056_v60  ;;  %v2560_v4 = vld [vmem:[%s5690_s13 + $0x18] sm:$0xff] }
 0x658   : > { %2724 = vst.msk [vmem:[#allocation2 + $0x10] sm:$0xff] %vm1201_vm4, %v2715_v6  ;;  %v2555_v8 = vmax.f32 %v2551_v0, %v2553_v5  ;;  %v3577_v0 = vld [vmem:[%s5695_s18 + $0x8] sm:$0xff]  ;;  %v2559_v2 = vld [vmem:[%s5690_s13 + $0x10] sm:$0xff] }
 0x659   : > { %v2979_v27 = vld [vmem:[#allocation2 + $0x48] sm:$0xff]  ;;  %v3582_v60 = vld [vmem:[%s5695_s18 + $0x30] sm:$0xff] }
 0x65a   : > { %v4544_v9 = vpop.f32.mrb[30].mxu0  ;;  %v2971_v10 = vld [vmem:[#allocation2 + $0x8] sm:$0xff]  ;;  %v5522_v12 = vpack.c.bf16 %v2556_v7, %v2555_v8  ;;  %v2978_v26 = vld [vmem:[#allocation2 + $0x40] sm:$0xff] }
 0x65b   : > { %2805 = vst.msk [vmem:[#allocation2 + $0x28] sm:$0xff] %vm1201_vm4, %v4544_v9  ;;  %v2795_v13 = vpop.f32.mrb[31].mxu0  ;;  %v2970_v14 = vld [vmem:[#allocation2] sm:$0xff]  ;;  %v4835_v31 = vpack.c.bf16 %v2979_v27, %v2978_v26 }
 0x65c   : > { %2804 = vst.msk [vmem:[#allocation2 + $0x20] sm:$0xff] %vm1201_vm4, %v2795_v13  ;;  %v4819_v15 = vpack.c.bf16 %v2971_v10, %v2970_v14 }
 0x65e   : > { %v4551_v16 = vpop.f32.mrb[32].mxu0  ;;  %4820 = vmatprep.subr.bf16.mxu1 %v4819_v15  ;;  %v2973_v17 = vld [vmem:[#allocation2 + $0x18] sm:$0xff] }
 0x65f   : > { %2885 = vst.msk [vmem:[#allocation2 + $0x38] sm:$0xff] %vm1201_vm4, %v4551_v16  ;;  %v2875_v18 = vpop.f32.mrb[33].mxu0  ;;  %4822 = vmatpush3.bf16.msra.mxu1 %v4819_v15  ;;  %v2972_v19 = vld [vmem:[#allocation2 + $0x10] sm:$0xff] }
 0x660   : > { %2884 = vst.msk [vmem:[#allocation2 + $0x30] sm:$0xff] %vm1201_vm4, %v2875_v18  ;;  %v4823_v20 = vpack.c.bf16 %v2973_v17, %v2972_v19 }
 0x662   : > { %4824 = vmatprep.subr.bf16.mxu1 %v4823_v20  ;;  %v2975_v21 = vld [vmem:[#allocation2 + $0x28] sm:$0xff] }
 0x663   : > { %4826 = vmatpush3.bf16.msra.mxu1 %v4823_v20  ;;  %v2974_v22 = vld [vmem:[#allocation2 + $0x20] sm:$0xff] }
 0x664   : > { %v4827_v23 = vpack.c.bf16 %v2975_v21, %v2974_v22 }
 0x666   : > { %4828 = vmatprep.subr.bf16.mxu1 %v4827_v23  ;;  %v2977_v24 = vld [vmem:[#allocation2 + $0x38] sm:$0xff] }
 0x667   : > { %4830 = vmatpush3.bf16.msra.mxu1 %v4827_v23  ;;  %v2976_v25 = vld [vmem:[#allocation2 + $0x30] sm:$0xff] }
 0x668   : > { %v4831_v28 = vpack.c.bf16 %v2977_v24, %v2976_v25 }
 0x66a   : > { %4832 = vmatprep.subr.bf16.mxu1 %v4831_v28 }
 0x66b   : > { %4834 = vmatpush3.bf16.msra.mxu1 %v4831_v28 }
 0x66c   : > { %4836 = vmatprep.subr.bf16.mxu1 %v4835_v31 }
 0x66f   : > { %4838 = vmatpush3.bf16.msra.mxu1 %v4835_v31 }
 0x670   : > { %4840 = vmatprep.subr.bf16.mxu1 %v4839_v32 }
 0x672   : > { %4580 = vmatmul.mubr.msk.f32.vlgmr.msra.gmra.mrb[22].mxu1 %vm2192_vm6, %v2967_v33 }
 0x673   : > { %4582 = vmatprep.mubr.msk.f32.mxu1 %vm2192_vm6, %v2968_v34  ;;  %4842 = vmatpush3.bf16.msra.mxu1 %v4839_v32 }
 0x674   : > { %4844 = vmatprep.subr.bf16.mxu1 %v4843_v40 }
 0x676   : > { %4583 = vmatmul.mubr.msk.f32.gmra.mrb[24].mxu1 %vm2192_vm6, %v2969_v35 }
 0x745   : > { %v4581_v43 = vpop.f32.mrb[22].mxu1 }
 0x746   : > { %v3088_v44 = vadd.f32 %v4581_v43, %v2992_v41  ;;  %v3082_v45 = vpop.f32.mrb[23].mxu1 }
 0x747   : > { %v3083_v46 = vadd.f32 %v3082_v45, %v2987_v42 }
 0x748   : > { %v3102_v53 = vmax.f32 %v3088_v44, 0.0 }
 0x749   : > { %v3101_v50 = vmax.f32 %v3083_v46, 0.0  ;;  %v4584_v51 = vpop.f32.mrb[24].mxu1 }
 0x74a   : > { %v3098_v54 = vadd.f32 %v4584_v51, %v3002_v49  ;;  %v3092_v55 = vpop.f32.mrb[25].mxu1 }
 0x74b   : > { %v3093_v57 = vadd.f32 %v3092_v55, %v2997_v52  ;;  %4589 = vmatprep.mubr.msk.f32.mxu1 %vm1201_vm4, %v3101_v50  ;;  %4619 = vmatprep.mubr.msk.f32.mxu0 %vm1201_vm4, %v3101_v50  ;;  %v3576_v55 = vld [vmem:[%s5695_s18] sm:$0xff] }
 0x74c   : > { %4590 = vmatmul.mubr.msk.f32.vlgmr.msra.gmra.mrb[26].mxu1 %vm1201_vm4, %v3102_v53  ;;  %4620 = vmatmul.mubr.msk.f32.vlgmr.msra.gmra.mrb[34].mxu0 %vm1201_vm4, %v3102_v53  ;;  %v3104_v59 = vmax.f32 %v3098_v54, 0.0 }
 0x74d   : > { %v3103_v58 = vmax.f32 %v3093_v57, 0.0  ;;  %4846 = vmatpush3.bf16.msra.mxu1 %v4843_v40  ;;  %v3578_v57 = vld [vmem:[%s5695_s18 + $0x10] sm:$0xff] }
 0x74e   : > { %4848 = vmatprep.subr.bf16.mxu1 %v4847_v56 }
 0x74f   : > { %4592 = vmatprep.mubr.msk.f32.mxu1 %vm1201_vm4, %v3103_v58  ;;  %4622 = vmatprep.mubr.msk.f32.mxu0 %vm1201_vm4, %v3103_v58 }
 0x750   : > { %4593 = vmatmul.mubr.msk.f32.gmra.mrb[28].mxu1 %vm1201_vm4, %v3104_v59  ;;  %4623 = vmatmul.mubr.msk.f32.gmra.mrb[36].mxu0 %vm1201_vm4, %v3104_v59 }
 0x751   : > { %4599 = vmatprep.mubr.msk.f32.mxu1 %vm1201_vm4, %v3101_v50  ;;  %4062 = vmatprep.mubr.msk.f32.mxu0 %vm655_vm0, %v3577_v0 }
 0x754   : > { %4600 = vmatmul.mubr.msk.f32.vlgmr.msra.gmra.mrb[30].mxu1 %vm1201_vm4, %v3102_v53 }
 0x755   : > { %4850 = vmatpush3.bf16.msra.mxu1 %v4847_v56  ;;  %4602 = vmatprep.mubr.msk.f32.mxu1 %vm1201_vm4, %v3103_v58  ;;  %v3579_v56 = vld [vmem:[%s5695_s18 + $0x18] sm:$0xff] }
 0x756   : > { %4856 = vmatprep.subr.bf16.mxu1 %v4855_v62 }
 0x758   : > { %4603 = vmatmul.mubr.msk.f32.gmra.mrb[32].mxu1 %vm1201_vm4, %v3104_v59 }
 0x759   : > { %4609 = vmatprep.mubr.msk.f32.mxu1 %vm1201_vm4, %v3101_v50 }
 0x75c   : > { %4610 = vmatmul.mubr.msk.f32.vlgmr.msra.gmra.mrb[34].mxu1 %vm1201_vm4, %v3102_v53 }
 0x75d   : > { %4858 = vmatpush3.bf16.msra.mxu1 %v4855_v62  ;;  %4612 = vmatprep.mubr.msk.f32.mxu1 %vm1201_vm4, %v3103_v58 }
 0x75e   : > { %4890 = vmatprep.subr.bf16.mxu1 %v5522_v12 }
 0x760   : > { %4613 = vmatmul.mubr.msk.f32.gmra.mrb[36].mxu1 %vm1201_vm4, %v3104_v59 }
 0x761   : > { %4629 = vmatprep.mubr.msk.f32.mxu1 %vm1201_vm4, %v3101_v50 }
 0x764   : > { %4630 = vmatmul.mubr.msk.f32.vlgmr.msra.gmra.mrb[38].mxu1 %vm1201_vm4, %v3102_v53 }
 0x765   : > { %4892 = vmatpush3.bf16.msra.mxu1 %v5522_v12  ;;  %4632 = vmatprep.mubr.msk.f32.mxu1 %vm1201_vm4, %v3103_v58  ;;  %v3580_v58 = vld [vmem:[%s5695_s18 + $0x20] sm:$0xff] }
 0x768   : > { %4633 = vmatmul.mubr.msk.f32.gmra.mrb[40].mxu1 %vm1201_vm4, %v3104_v59  ;;  %v3583_v59 = vld [vmem:[%s5695_s18 + $0x38] sm:$0xff] }
 0x769   : > { %4639 = vmatprep.mubr.msk.f32.mxu1 %vm1201_vm4, %v2557_v63 }
 0x76c   : > { %4640 = vmatmul.mubr.msk.f32.vlgmr.msra.gmra.mrb[42].mxu1 %vm1201_vm4, %v2558_v1  ;;  %v3805_v1 = vpop.permute.xlu0 %3804 }
 0x76d   : > { %4642 = vmatprep.mubr.msk.f32.mxu1 %vm1201_vm4, %v2559_v2  ;;  %v3810_v2 = vpop.permute.xlu1 %3809 }
 0x770   : > { %4643 = vmatmul.mubr.msk.f32.gmra.mrb[44].mxu1 %vm1201_vm4, %v2560_v4  ;;  %v3815_v4 = vpop.permute.xlu0 %3814 }
 0x81f   : > { %v4591_v5 = vpop.f32.mrb[26].mxu1  ;;  %v4621_v6 = vpop.f32.mrb[34].mxu0 }
 0x820   : > { %3205 = vst.msk [vmem:[#allocation2 + $0x8] sm:$0xff] %vm2274_vm5, %v4591_v5  ;;  %3481 = vst.msk [vmem:[#allocation2 + $0x68] sm:$0xff] %vm2274_vm5, %v4621_v6  ;;  %v3185_v7 = vpop.f32.mrb[27].mxu1  ;;  %v3461_v8 = vpop.f32.mrb[35].mxu0 }
 0x821   : > { %3204 = vst.msk [vmem:[#allocation2] sm:$0xff] %vm2274_vm5, %v3185_v7  ;;  %3480 = vst.msk [vmem:[#allocation2 + $0x60] sm:$0xff] %vm2274_vm5, %v3461_v8  ;;  %v3820_v8 = vpop.permute.xlu1 %3819 }
 0x823   : > { %v4594_v9 = vpop.f32.mrb[28].mxu1  ;;  %v4624_v10 = vpop.f32.mrb[36].mxu0 }
 0x824   : > { %3207 = vst.msk [vmem:[#allocation2 + $0x18] sm:$0xff] %vm2274_vm5, %v4594_v9  ;;  %3483 = vst.msk [vmem:[#allocation2 + $0x78] sm:$0xff] %vm2274_vm5, %v4624_v10  ;;  %v3195_v12 = vpop.f32.mrb[29].mxu1  ;;  %v3471_v13 = vpop.f32.mrb[37].mxu0 }
 0x825   : > { %3206 = vst.msk [vmem:[#allocation2 + $0x10] sm:$0xff] %vm2274_vm5, %v3195_v12  ;;  %3482 = vst.msk [vmem:[#allocation2 + $0x70] sm:$0xff] %vm2274_vm5, %v3471_v13  ;;  %v3833_v10 = vpop.permute.xlu0 %3832 }
 0x827   : > { %v4601_v14 = vpop.f32.mrb[30].mxu1  ;;  %v3585_v15 = vld [vmem:[#allocation2 + $0x8] sm:$0xff] }
 0x828   : > { %3297 = vst.msk [vmem:[#allocation2 + $0x28] sm:$0xff] %vm2274_vm5, %v4601_v14  ;;  %v3277_v16 = vpop.f32.mrb[31].mxu1  ;;  %v3584_v17 = vld [vmem:[#allocation2] sm:$0xff]  ;;  %v3597_v44 = vld [vmem:[#allocation2 + $0x68] sm:$0xff] }
 0x829   : > { %3296 = vst.msk [vmem:[#allocation2 + $0x20] sm:$0xff] %vm2274_vm5, %v3277_v16  ;;  %v4860_v18 = vpack.c.bf16 %v3585_v15, %v3584_v17  ;;  %v3596_v43 = vld [vmem:[#allocation2 + $0x60] sm:$0xff] }
 0x82a   : > { %v4878_v45 = vpack.c.bf16 %v3597_v44, %v3596_v43 }
 0x82b   : > { %v4604_v19 = vpop.f32.mrb[32].mxu1  ;;  %4861 = vmatpush1.bf16.msra.mxu0 %v4860_v18  ;;  %v3587_v20 = vld [vmem:[#allocation2 + $0x18] sm:$0xff]  ;;  %v3838_v18 = vpop.permute.xlu1 %3837 }
 0x82c   : > { %3299 = vst.msk [vmem:[#allocation2 + $0x38] sm:$0xff] %vm2274_vm5, %v4604_v19  ;;  %v3287_v21 = vpop.f32.mrb[33].mxu1  ;;  %4862 = vmatprep.subr.bf16.mxu0 %v4917_v3  ;;  %v3586_v22 = vld [vmem:[#allocation2 + $0x10] sm:$0xff]  ;;  %v3599_v47 = vld [vmem:[#allocation2 + $0x78] sm:$0xff] }
 0x82d   : > { %3298 = vst.msk [vmem:[#allocation2 + $0x30] sm:$0xff] %vm2274_vm5, %v3287_v21  ;;  %v4863_v23 = vpack.c.bf16 %v3587_v20, %v3586_v22  ;;  %v3598_v46 = vld [vmem:[#allocation2 + $0x70] sm:$0xff] }
 0x82e   : > { %v4881_v48 = vpack.c.bf16 %v3599_v47, %v3598_v46 }
 0x82f   : > { %v4611_v24 = vpop.f32.mrb[34].mxu1  ;;  %4864 = vmatpush1.bf16.msra.mxu0 %v4863_v23  ;;  %v3589_v25 = vld [vmem:[#allocation2 + $0x28] sm:$0xff] }
 0x830   : > { %3389 = vst.msk [vmem:[#allocation2 + $0x48] sm:$0xff] %vm2274_vm5, %v4611_v24  ;;  %v3369_v26 = vpop.f32.mrb[35].mxu1  ;;  %4865 = vmatprep.subr.bf16.mxu0 %v4917_v3  ;;  %v3588_v27 = vld [vmem:[#allocation2 + $0x20] sm:$0xff] }
 0x831   : > { %3388 = vst.msk [vmem:[#allocation2 + $0x40] sm:$0xff] %vm2274_vm5, %v3369_v26  ;;  %v4866_v28 = vpack.c.bf16 %v3589_v25, %v3588_v27  ;;  %v3843_v25 = vpop.permute.xlu0 %3842 }
 0x833   : > { %v4614_v29 = vpop.f32.mrb[36].mxu1  ;;  %4867 = vmatpush1.bf16.msra.mxu0 %v4866_v28  ;;  %v3591_v30 = vld [vmem:[#allocation2 + $0x38] sm:$0xff] }
 0x834   : > { %3391 = vst.msk [vmem:[#allocation2 + $0x58] sm:$0xff] %vm2274_vm5, %v4614_v29  ;;  %v3379_v31 = vpop.f32.mrb[37].mxu1  ;;  %4868 = vmatprep.subr.bf16.mxu0 %v4917_v3  ;;  %v3590_v32 = vld [vmem:[#allocation2 + $0x30] sm:$0xff] }
 0x835   : > { %3390 = vst.msk [vmem:[#allocation2 + $0x50] sm:$0xff] %vm2274_vm5, %v3379_v31  ;;  %v4869_v33 = vpack.c.bf16 %v3591_v30, %v3590_v32  ;;  %v3848_v32 = vpop.permute.xlu1 %3847 }
 0x837   : > { %v4631_v34 = vpop.f32.mrb[38].mxu1  ;;  %4870 = vmatpush1.bf16.msra.mxu0 %v4869_v33  ;;  %v3593_v35 = vld [vmem:[#allocation2 + $0x48] sm:$0xff] }
 0x838   : > { %3573 = vst.msk [vmem:[#allocation2 + $0x88] sm:$0xff] %vm2274_vm5, %v4631_v34  ;;  %v3553_v11 = vpop.f32.mrb[39].mxu1  ;;  %4871 = vmatprep.subr.bf16.mxu0 %v4917_v3  ;;  %v3592_v36 = vld [vmem:[#allocation2 + $0x40] sm:$0xff] }
 0x839   : > { %3572 = vst.msk [vmem:[#allocation2 + $0x80] sm:$0xff] %vm2274_vm5, %v3553_v11  ;;  %v4872_v37 = vpack.c.bf16 %v3593_v35, %v3592_v36 }
 0x83b   : > { %v4634_v38 = vpop.f32.mrb[40].mxu1  ;;  %4873 = vmatpush1.bf16.msra.mxu0 %v4872_v37  ;;  %v3595_v39 = vld [vmem:[#allocation2 + $0x58] sm:$0xff] }
 0x83c   : > { %3575 = vst.msk [vmem:[#allocation2 + $0x98] sm:$0xff] %vm2274_vm5, %v4634_v38  ;;  %v3563_v40 = vpop.f32.mrb[41].mxu1  ;;  %4874 = vmatprep.subr.bf16.mxu0 %v4917_v3  ;;  %v3594_v41 = vld [vmem:[#allocation2 + $0x50] sm:$0xff] }
 0x83d   : > { %3574 = vst.msk [vmem:[#allocation2 + $0x90] sm:$0xff] %vm2274_vm5, %v3563_v40  ;;  %v4875_v42 = vpack.c.bf16 %v3595_v39, %v3594_v41 }
 0x83f   : > { %4876 = vmatpush1.bf16.msra.mxu0 %v4875_v42  ;;  %v3601_v50 = vld [vmem:[#allocation2 + $0x88] sm:$0xff]  ;;  %v4641_v61 = vpop.f32.mrb[42].mxu1 }
 0x840   : > { %4877 = vmatprep.subr.bf16.mxu0 %v4917_v3  ;;  %v3600_v49 = vld [vmem:[#allocation2 + $0x80] sm:$0xff]  ;;  %v3779_v62 = vpop.f32.mrb[43].mxu1 }
 0x841   : > { %v4884_v51 = vpack.c.bf16 %v3601_v50, %v3600_v49 }
 0x843   : > { %4879 = vmatpush1.bf16.msra.mxu0 %v4878_v45  ;;  %v3603_v53 = vld [vmem:[#allocation2 + $0x98] sm:$0xff]  ;;  %v4644_v63 = vpop.f32.mrb[44].mxu1 }
 0x844   : > { %4880 = vmatprep.subr.bf16.mxu0 %v4917_v3  ;;  %v3602_v52 = vld [vmem:[#allocation2 + $0x90] sm:$0xff]  ;;  %v3789_v0 = vpop.f32.mrb[45].mxu1 }
 0x845   : > { %v4887_v54 = vpack.c.bf16 %v3603_v53, %v3602_v52 }
 0x847   : > { %4882 = vmatpush1.bf16.msra.mxu0 %v4881_v48 }
 0x848   : > { %4883 = vmatprep.subr.bf16.mxu0 %v4917_v3 }
 0x84b   : > { %4885 = vmatpush1.bf16.msra.mxu0 %v4884_v51 }
 0x84c   : > { %4886 = vmatprep.subr.bf16.mxu0 %v4917_v3  ;;  %v3581_v3 = vld [vmem:[%s5695_s18 + $0x28] sm:$0xff] }
 0x84f   : > { %4888 = vmatpush1.bf16.msra.mxu0 %v4887_v54 }
 0x852   : > { %3681 = vmatmul.mubr.f32.vlgmr.msra.gmra.mrb[38].mxu0 %v3576_v55 }
 0x853   : > { %4063 = vmatprep.mubr.msk.f32.mxu0 %vm655_vm0, %v3579_v56 }
 0x856   : > { %3686 = vmatmul.mubr.f32.gmra.mrb[40].mxu0 %v3578_v57 }
 0x857   : > { %4064 = vmatprep.mubr.msk.f32.mxu0 %vm655_vm0, %v3581_v3 }
 0x85a   : > { %3691 = vmatmul.mubr.f32.gmra.mrb[42].mxu0 %v3580_v58 }
 0x85b   : > { %4065 = vmatprep.mubr.msk.f32.mxu0 %vm655_vm0, %v3583_v59 }
 0x85e   : > { %3696 = vmatmul.mubr.f32.gmra.mrb[44].mxu0 %v3582_v60 }
 0x925   : > { %v3682_v5 = vpop.f32.mrb[38].mxu0 }
 0x926   : > { %v3780_v6 = vadd.f32 %v3779_v62, %v3682_v5  ;;  %v3684_v7 = vpop.f32.mrb[39].mxu0 }
 0x928   : > { %v3822_v9 = vmul.f32 %v3805_v1, %v3780_v6 }
 0x929   : > { %v3687_v12 = vpop.f32.mrb[40].mxu0 }
 0x92a   : > { %v3850_v13 = vadd.f32 %v3833_v10, %v3822_v9  ;;  %v3785_v14 = vadd.f32 %v4641_v61, %v3687_v12  ;;  %v3689_v15 = vpop.f32.mrb[41].mxu0 }
 0x92c   : > { %v3854_v16 = vmax.f32 %v3850_v13, 0.0  ;;  %v3823_v17 = vmul.f32 %v3810_v2, %v3785_v14 }
 0x92d   : > { %v3692_v19 = vpop.f32.mrb[42].mxu0 }
 0x92e   : > { %3858 = vst.msk [vmem:[%s653_s24] sm:$0xff] %vm2274_vm5, %v3854_v16  ;;  %v3851_v20 = vadd.f32 %v3838_v18, %v3823_v17  ;;  %v3790_v21 = vadd.f32 %v3789_v0, %v3692_v19  ;;  %v3694_v22 = vpop.f32.mrb[43].mxu0 }
 0x930   : > { %v3855_v23 = vmax.f32 %v3851_v20, 0.0  ;;  %v3824_v24 = vmul.f32 %v3815_v4, %v3790_v21 }
 0x931   : > { %v3697_v26 = vpop.f32.mrb[44].mxu0 }
 0x932   : > { %3859 = vst.msk [vmem:[%s653_s24 + $0x8] sm:$0xff] %vm2274_vm5, %v3855_v23  ;;  %v3852_v27 = vadd.f32 %v3843_v25, %v3824_v24  ;;  %v3795_v28 = vadd.f32 %v4644_v63, %v3697_v26  ;;  %v3699_v29 = vpop.f32.mrb[45].mxu0 }
 0x934   : > { %v3856_v30 = vmax.f32 %v3852_v27, 0.0  ;;  %v3825_v31 = vmul.f32 %v3820_v8, %v3795_v28 }
 0x936   : > { %3860 = vst.msk [vmem:[%s653_s24 + $0x10] sm:$0xff] %vm2274_vm5, %v3856_v30  ;;  %v3853_v33 = vadd.f32 %v3848_v32, %v3825_v31 }
 0x938   : > { %v3857_v34 = vmax.f32 %v3853_v33, 0.0 }
 0x93a   : > { %3861 = vst.msk [vmem:[%s653_s24 + $0x18] sm:$0xff] %vm2274_vm5, %v3857_v34 }
 0x93b PF: > { %s31_s2 = sadd.s32 1, %s4915_s2  }
 0x93c   : > { %p28_p4 = scmp.ge.s32.totalorder %s31_s2, 4  }
 0x93e   :  { %30 = sbr.rel (!%p28_p4) target bundleno = 7 (0x7), region = 156 }

</bundles_post_ra>
